<compile_context>
chip_gen: v5e
topology: v5e:2x2
jax: 0.10.0
libtpu: 0.0.40
codegen_flags: <defaults>
</compile_context>

<pallas_src>
import functools

import jax
import jax.numpy as jnp
from jax import lax
from jax.experimental import pallas as pl
from jax.experimental.pallas import tpu as pltpu

# ---------------------------------------------------------------------------
# Model dimensions (reconstruction -- see TODO above).
#   x : (NB, GRP, NUM_SNPS + NUM_COV)
# ---------------------------------------------------------------------------
GRP, NUM_SNPS, NUM_COV = 8, 16, 8
ENC, SH, SO = 32, 32, 16
CH = 16
EH, OUT = 32, 2

W_SLAB = 32          # lane width of the packed weight / bias slabs
OUT_SUB = 8          # padded sublane height of the transposed output
TM_DEFAULT = 1024    # default samples (rows) per grid step (sweepable)

# Row offsets inside the packed weight slab (all sublane-aligned).
_R_ENC = 0
_R_ATT = _R_ENC + GRP * NUM_SNPS   # 128  w_enc_fold   (GRP*S, ENC)
_R_S1 = _R_ATT + ENC               # 160  w_att        (ENC, ENC)
_R_S2 = _R_S1 + ENC                # 192  w_s1         (ENC, SH)
_R_C1 = _R_S2 + SH                 # 224  w_s2 padded  (SH, 32)
_R_C2 = _R_C1 + GRP * NUM_COV      # 288  w_c1_fold    (GRP*C, 32)
_R_E1S = _R_C2 + W_SLAB            # 320  w_c2 padded  (32, 32)
_R_E1C = _R_E1S + W_SLAB           # 352  w_e1s padded (32, EH)
_R_E2 = _R_E1C + W_SLAB            # 384  w_e1c padded (32, EH)
_R_END = _R_E2 + OUT_SUB           # 392  w_e2_t       (8, EH)


# ---------------------------------------------------------------------------
# Kernel: one tile of `block_m` samples; all weights resident in VMEM slabs.
# ---------------------------------------------------------------------------
def full_model_kernel(xs_ref, xc_ref, w_ref, b_ref, be2_ref, o_ref):
    f32 = jnp.float32
    cd = w_ref.dtype                    # matmul operand dtype (f32 or bf16)
    b = b_ref[...]                      # (8, W_SLAB) f32 biases (row per layer)

    # --- gene branch: Conv1d(k=1) snp_enc + AvgPool1d(GRP) folded into one
    #     (tm, GRP*S) @ (GRP*S, ENC) matmul ----------------------------------
    snps_pooled = jnp.dot(xs_ref[...], w_ref[_R_ENC:_R_ATT, :],
                          preferred_element_type=f32) + b[0]      # (tm, ENC)

    # --- gene_model.att_mask: softmax(Linear(x), -1) * x (exact division) ---
    logits = jnp.dot(snps_pooled.astype(cd), w_ref[_R_ATT:_R_S1, :],
                     preferred_element_type=f32) + b[1]
    e = jnp.exp(logits - jnp.max(logits, axis=-1, keepdims=True))
    att_out = (e / jnp.sum(e, axis=-1, keepdims=True)) * snps_pooled

    # --- gene_model.snps_model: Linear -> ReLU -> Linear (SO zero-padded) ---
    h = jnp.maximum(jnp.dot(att_out.astype(cd), w_ref[_R_S1:_R_S2, :],
                            preferred_element_type=f32) + b[2], 0.0)
    snps_out = jnp.dot(h.astype(cd), w_ref[_R_S2:_R_C1, :],
                       preferred_element_type=f32) + b[3]         # (tm, 32)

    # --- cov branch: AvgPool folded into w_c1; last end_model lin = Identity
    c1 = jnp.maximum(jnp.dot(xc_ref[...], w_ref[_R_C1:_R_C2, :],
                             preferred_element_type=f32) + b[4], 0.0)
    cov_out = jnp.maximum(jnp.dot(c1.astype(cd), w_ref[_R_C2:_R_E1S, :],
                                  preferred_element_type=f32) + b[5], 0.0)

    # --- torch.cat((snps_out, cov_out), -1) + end_model first Linear --------
    # implemented as a split matmul (identical to concat @ W.T; padded rows
    # of w_e1s/w_e1c are zero so the zero-padded activation lanes contribute 0)
    eh = jnp.maximum(
        jnp.dot(snps_out.astype(cd), w_ref[_R_E1S:_R_E1C, :],
                preferred_element_type=f32)
        + jnp.dot(cov_out.astype(cd), w_ref[_R_E1C:_R_E2, :],
                  preferred_element_type=f32)
        + b[6], 0.0)                                              # (tm, EH)

    # --- end_model last Linear, TRANSPOSED + lane-dense: (OUT_SUB, tm) ------
    o_ref[...] = lax.dot_general(
        w_ref[_R_E2:_R_END, :], eh.astype(cd),
        dimension_numbers=(((1,), (1,)), ((), ())),
        preferred_element_type=f32) + be2_ref[...]


# ---------------------------------------------------------------------------
# One-time parameter preprocessing: fold the GRP average-pool into the first
# layer of each branch, transpose to (in, out), zero-pad everything to a
# common 32-lane slab width, pack into one weight slab + one bias slab, and
# store the last layer transposed (OUT_SUB, EH) for the lane-dense output.
# ---------------------------------------------------------------------------
def prepare_params(p, compute_dtype=jnp.float32):
    assert ENC == SH == EH == W_SLAB and SO <= W_SLAB and CH <= W_SLAB
    assert OUT <= OUT_SUB
    f32 = jnp.float32

    def pad_cols(a, w=W_SLAB):
        return jnp.pad(a, ((0, 0), (0, w - a.shape[1])))

    def pad_rows(a, r):
        return jnp.pad(a, ((0, r - a.shape[0]), (0, 0)))

    # Fold AvgPool1d(GRP) into the first-layer weights (GRP flattened to lanes).
    w_enc_fold = jnp.tile(p['w_enc'].T, (GRP, 1)) / GRP            # (128, 32)
    w_c1_fold = pad_cols(jnp.tile(p['w_c1'].T, (GRP, 1)) / GRP)    # (64, 32)

    w_att = p['w_att'].T                                           # (32, 32)
    w_s1 = p['w_s1'].T                                             # (32, 32)
    w_s2 = pad_cols(p['w_s2'].T)                                   # (32, 32)
    w_c2 = pad_cols(pad_rows(p['w_c2'].T, W_SLAB))                 # (32, 32)
    w_e1s = pad_rows(p['w_e1'][:, :SO].T, W_SLAB)                  # (32, 32)
    w_e1c = pad_rows(p['w_e1'][:, SO:].T, W_SLAB)                  # (32, 32)
    w_e2t = pad_rows(p['w_e2'], OUT_SUB)                           # (8, 32)

    w_slab = jnp.concatenate(
        [w_enc_fold, w_att, w_s1, w_s2, w_c1_fold, w_c2, w_e1s, w_e1c, w_e2t],
        axis=0).astype(compute_dtype)
    assert w_slab.shape == (_R_END, W_SLAB), w_slab.shape

    def pad_vec(v, w=W_SLAB):
        return jnp.pad(v, (0, w - v.shape[0]))

    b_slab = jnp.stack(
        [pad_vec(p['b_enc']), pad_vec(p['b_att']), pad_vec(p['b_s1']),
         pad_vec(p['b_s2']), pad_vec(p['b_c1']), pad_vec(p['b_c2']),
         pad_vec(p['b_e1']), jnp.zeros((W_SLAB,), f32)], axis=0).astype(f32)

    b_e2 = jnp.zeros((OUT_SUB, 1), f32).at[:OUT, 0].set(p['b_e2'])
    return dict(w_slab=w_slab, b_slab=b_slab, b_e2=b_e2)


@functools.partial(jax.jit, static_argnames=("out_dim", "block_m"))
def full_model_forward(xs, xc, prep, out_dim=OUT, block_m=TM_DEFAULT):
    """xs: (NB, GRP, NUM_SNPS), xc: (NB, GRP, NUM_COV) -> (NB, out_dim)."""
    nb, grp, ns = xs.shape
    nc = xc.shape[-1]
    cd = prep['w_slab'].dtype

    # Flatten GRP into the lane axis (free row-major reshape) + cast once.
    xs2 = xs.reshape(nb, grp * ns).astype(cd)
    xc2 = xc.reshape(nb, grp * nc).astype(cd)

    # Pick the tile: large (amortize ~0.35us/step pipeline overhead), but keep
    # the grid >= 2 steps so both v7x TensorCores get work; multiple of 128.
    bm = min(block_m, max(128, pl.cdiv(pl.cdiv(nb, 2), 128) * 128))
    nb_pad = pl.cdiv(nb, bm) * bm
    if nb_pad != nb:
        xs2 = jnp.pad(xs2, ((0, nb_pad - nb), (0, 0)))
        xc2 = jnp.pad(xc2, ((0, nb_pad - nb), (0, 0)))

    def resident(a):
        # Full-array block, constant index_map -> stays resident in VMEM.
        return pl.BlockSpec(a.shape, lambda i: (0, 0))

    out_t = pl.pallas_call(
        full_model_kernel,
        out_shape=jax.ShapeDtypeStruct((OUT_SUB, nb_pad), jnp.float32),
        grid=(nb_pad // bm,),
        in_specs=[pl.BlockSpec((bm, grp * ns), lambda i: (i, 0)),
                  pl.BlockSpec((bm, grp * nc), lambda i: (i, 0)),
                  resident(prep['w_slab']),
                  resident(prep['b_slab']),
                  resident(prep['b_e2'])],
        out_specs=pl.BlockSpec((OUT_SUB, bm), lambda i: (0, i)),
        compiler_params=pltpu.CompilerParams(
            dimension_semantics=("parallel",),          # v7x: shard across TCs
            vmem_limit_bytes=32 * 1024 * 1024),
    )(xs2, xc2, prep['w_slab'], prep['b_slab'], prep['b_e2'])

    # (OUT_SUB, nb_pad) transposed output -> (nb, out_dim).
    return out_t[:out_dim, :nb].T


# ---------------------------------------------------------------------------
# Deterministic synthetic parameters + pure-JAX reference (PyTorch order).
# ---------------------------------------------------------------------------
def init_params(key):
    ks = jax.random.split(key, 16)
    w = lambda k, shape: 0.1 * jax.random.normal(k, shape, dtype=jnp.float32)
    return dict(
        w_enc=w(ks[0], (ENC, NUM_SNPS)),  b_enc=w(ks[1], (ENC,)),
        w_att=w(ks[2], (ENC, ENC)),       b_att=w(ks[3], (ENC,)),
        w_s1=w(ks[4], (SH, ENC)),         b_s1=w(ks[5], (SH,)),
        w_s2=w(ks[6], (SO, SH)),          b_s2=w(ks[7], (SO,)),
        w_c1=w(ks[8], (CH, NUM_COV)),     b_c1=w(ks[9], (CH,)),
        w_c2=w(ks[10], (CH, CH)),         b_c2=w(ks[11], (CH,)),
        w_e1=w(ks[12], (EH, SO + CH)),    b_e1=w(ks[13], (EH,)),
        w_e2=w(ks[14], (OUT, EH)),        b_e2=w(ks[15], (OUT,)),
    )


def reference_forward(x, p):
    """Pure-JAX reference mirroring the PyTorch forward order exactly."""
    xs = x[:, :, :NUM_SNPS]                                   # (NB, GRP, S)
    xt = jnp.transpose(xs, (0, 2, 1))                         # transpose(1, 2)
    enc = jnp.einsum('es,bsg->beg', p['w_enc'], xt) + p['b_enc'][None, :, None]
    pooled = jnp.mean(enc, axis=-1)                           # AvgPool1d + squeeze
    att = jax.nn.softmax(pooled @ p['w_att'].T + p['b_att'], axis=-1) * pooled
    h = jax.nn.relu(att @ p['w_s1'].T + p['b_s1'])
    snps_out = h @ p['w_s2'].T + p['b_s2']
    xc = x[:, :, NUM_SNPS:]
    cov_pooled = jnp.mean(xc, axis=1)
    c1 = jax.nn.relu(cov_pooled @ p['w_c1'].T + p['b_c1'])
    cov_out = jax.nn.relu(c1 @ p['w_c2'].T + p['b_c2'])
    data_vec = jnp.concatenate([snps_out, cov_out], axis=-1)
    eh = jax.nn.relu(data_vec @ p['w_e1'].T + p['b_e1'])
    return eh @ p['w_e2'].T + p['b_e2']


if __name__ == "__main__":
    key = jax.random.PRNGKey(0)
    kx, kp = jax.random.split(key)

    NB = 256   # batched samples (many gene windows / large batch stacked)
    x = jax.random.normal(kx, (NB, GRP, NUM_SNPS + NUM_COV), dtype=jnp.float32)
    params = init_params(kp)

    xs = x[:, :, :NUM_SNPS]
    xc = x[:, :, NUM_SNPS:]
    ref = reference_forward(x, params)

    # f32 matmul-operand path: tight check vs reference.
    prep_f32 = prepare_params(params, compute_dtype=jnp.float32)
    out = full_model_forward(xs, xc, prep_f32, out_dim=OUT)
    out = jax.block_until_ready(out)
    assert out.shape == (NB, OUT), out.shape
    assert jnp.allclose(out, ref, rtol=1e-3, atol=1e-3), \
        f"max abs diff {float(jnp.max(jnp.abs(out - ref)))}"

    # bf16 matmul-operand path (MXU native rate on all generations, incl v5e),
    # f32 accumulation + f32 elementwise.
    prep_bf16 = prepare_params(params, compute_dtype=jnp.bfloat16)
    out_bf16 = jax.block_until_ready(
        full_model_forward(xs, xc, prep_bf16, out_dim=OUT))
    assert out_bf16.shape == (NB, OUT), out_bf16.shape
    assert jnp.allclose(out_bf16, ref, rtol=5e-2, atol=5e-2), \
        f"max abs diff (bf16) {float(jnp.max(jnp.abs(out_bf16 - ref)))}"

    print("KERNEL_OK")
</pallas_src>

<mosaic_0001>
module attributes {stable_mosaic.version = 11 : i64} {
  func.func @full_model_kernel(%arg0: i32, %arg1: memref<128x128xf32, #tpu.memory_space<vmem>>, %arg2: memref<128x64xf32, #tpu.memory_space<vmem>>, %arg3: memref<392x32xf32, #tpu.memory_space<vmem>>, %arg4: memref<8x32xf32, #tpu.memory_space<vmem>>, %arg5: memref<8x1xf32, #tpu.memory_space<vmem>>, %arg6: memref<8x128xf32, #tpu.memory_space<vmem>>) attributes {dimension_semantics = [#tpu.dimension_semantics<parallel>], iteration_bounds = array<i64: 2>, scalar_prefetch = 0 : i64, scratch_operands = 0 : i64, tpu.core_type = #tpu.core_type<tc>, window_params = [{transform_indices = @transform_0, window_bounds = array<i64: 128, 128>}, {transform_indices = @transform_1, window_bounds = array<i64: 128, 64>}, {pipeline_mode = #tpu.pipeline_mode<synchronous>, transform_indices = @transform_2, window_bounds = array<i64: 392, 32>}, {pipeline_mode = #tpu.pipeline_mode<synchronous>, transform_indices = @transform_3, window_bounds = array<i64: 8, 32>}, {pipeline_mode = #tpu.pipeline_mode<synchronous>, transform_indices = @transform_4, window_bounds = array<i64: 8, 1>}, {transform_indices = @transform_5, window_bounds = array<i64: 8, 128>}]} {
    %c0 = arith.constant 0 : index
    %c0_0 = arith.constant 0 : index
    %0 = vector.load %arg4[%c0, %c0_0] : memref<8x32xf32, #tpu.memory_space<vmem>>, vector<8x32xf32>
    %c0_1 = arith.constant 0 : index
    %c0_2 = arith.constant 0 : index
    %1 = vector.load %arg1[%c0_1, %c0_2] : memref<128x128xf32, #tpu.memory_space<vmem>>, vector<128x128xf32>
    %c0_3 = arith.constant 0 : index
    %c0_4 = arith.constant 0 : index
    %2 = vector.load %arg3[%c0_3, %c0_4] : memref<392x32xf32, #tpu.memory_space<vmem>>, vector<128x32xf32>
    %cst = arith.constant dense<0.000000e+00> : vector<128x32xf32>
    %3 = tpu.matmul %1, %2, %cst {dimension_numbers = #tpu.dot_dimension_numbers<[1], [0], [0], [1], [0, 0, 1, 1], [], []>} : vector<128x128xf32>, vector<128x32xf32>, vector<128x32xf32> -> vector<128x32xf32>
    %4 = vector.extract_strided_slice %0 {offsets = [0, 0], sizes = [1, 32], strides = [1, 1]} : vector<8x32xf32> to vector<1x32xf32>
    %5 = vector.shape_cast %4 : vector<1x32xf32> to vector<32xf32>
    %6 = vector.shape_cast %5 : vector<32xf32> to vector<1x32xf32>
    %7 = vector.broadcast %6 : vector<1x32xf32> to vector<128x32xf32>
    %8 = arith.addf %3, %7 : vector<128x32xf32>
    %c128 = arith.constant 128 : index
    %c0_5 = arith.constant 0 : index
    %9 = vector.load %arg3[%c128, %c0_5] : memref<392x32xf32, #tpu.memory_space<vmem>>, vector<32x32xf32>
    %cst_6 = arith.constant dense<0.000000e+00> : vector<128x32xf32>
    %10 = tpu.matmul %8, %9, %cst_6 {dimension_numbers = #tpu.dot_dimension_numbers<[1], [0], [0], [1], [0, 0, 1, 1], [], []>} : vector<128x32xf32>, vector<32x32xf32>, vector<128x32xf32> -> vector<128x32xf32>
    %11 = vector.extract_strided_slice %0 {offsets = [1, 0], sizes = [1, 32], strides = [1, 1]} : vector<8x32xf32> to vector<1x32xf32>
    %12 = vector.shape_cast %11 : vector<1x32xf32> to vector<32xf32>
    %13 = vector.shape_cast %12 : vector<32xf32> to vector<1x32xf32>
    %14 = vector.broadcast %13 : vector<1x32xf32> to vector<128x32xf32>
    %15 = arith.addf %10, %14 : vector<128x32xf32>
    %cst_7 = arith.constant dense<0xFF800000> : vector<128xf32>
    %16 = vector.multi_reduction <maximumf>, %15, %cst_7 [1] : vector<128x32xf32> to vector<128xf32>
    %17 = vector.shape_cast %16 : vector<128xf32> to vector<128x1xf32>
    %18 = vector.broadcast %17 : vector<128x1xf32> to vector<128x32xf32>
    %19 = arith.subf %15, %18 : vector<128x32xf32>
    %20 = math.exp %19 : vector<128x32xf32>
    %cst_8 = arith.constant dense<0.000000e+00> : vector<128xf32>
    %21 = vector.multi_reduction <add>, %20, %cst_8 [1] : vector<128x32xf32> to vector<128xf32>
    %22 = vector.shape_cast %21 : vector<128xf32> to vector<128x1xf32>
    %23 = vector.broadcast %22 : vector<128x1xf32> to vector<128x32xf32>
    %24 = arith.divf %20, %23 : vector<128x32xf32>
    %25 = arith.mulf %24, %8 : vector<128x32xf32>
    %c160 = arith.constant 160 : index
    %c0_9 = arith.constant 0 : index
    %26 = vector.load %arg3[%c160, %c0_9] : memref<392x32xf32, #tpu.memory_space<vmem>>, vector<32x32xf32>
    %cst_10 = arith.constant dense<0.000000e+00> : vector<128x32xf32>
    %27 = tpu.matmul %25, %26, %cst_10 {dimension_numbers = #tpu.dot_dimension_numbers<[1], [0], [0], [1], [0, 0, 1, 1], [], []>} : vector<128x32xf32>, vector<32x32xf32>, vector<128x32xf32> -> vector<128x32xf32>
    %28 = vector.extract_strided_slice %0 {offsets = [2, 0], sizes = [1, 32], strides = [1, 1]} : vector<8x32xf32> to vector<1x32xf32>
    %29 = vector.shape_cast %28 : vector<1x32xf32> to vector<32xf32>
    %30 = vector.shape_cast %29 : vector<32xf32> to vector<1x32xf32>
    %31 = vector.broadcast %30 : vector<1x32xf32> to vector<128x32xf32>
    %32 = arith.addf %27, %31 : vector<128x32xf32>
    %cst_11 = arith.constant 0.000000e+00 : f32
    %33 = vector.broadcast %cst_11 : f32 to vector<128x32xf32>
    %34 = arith.maximumf %32, %33 : vector<128x32xf32>
    %c192 = arith.constant 192 : index
    %c0_12 = arith.constant 0 : index
    %35 = vector.load %arg3[%c192, %c0_12] : memref<392x32xf32, #tpu.memory_space<vmem>>, vector<32x32xf32>
    %cst_13 = arith.constant dense<0.000000e+00> : vector<128x32xf32>
    %36 = tpu.matmul %34, %35, %cst_13 {dimension_numbers = #tpu.dot_dimension_numbers<[1], [0], [0], [1], [0, 0, 1, 1], [], []>} : vector<128x32xf32>, vector<32x32xf32>, vector<128x32xf32> -> vector<128x32xf32>
    %37 = vector.extract_strided_slice %0 {offsets = [3, 0], sizes = [1, 32], strides = [1, 1]} : vector<8x32xf32> to vector<1x32xf32>
    %38 = vector.shape_cast %37 : vector<1x32xf32> to vector<32xf32>
    %39 = vector.shape_cast %38 : vector<32xf32> to vector<1x32xf32>
    %40 = vector.broadcast %39 : vector<1x32xf32> to vector<128x32xf32>
    %41 = arith.addf %36, %40 : vector<128x32xf32>
    %c0_14 = arith.constant 0 : index
    %c0_15 = arith.constant 0 : index
    %42 = vector.load %arg2[%c0_14, %c0_15] : memref<128x64xf32, #tpu.memory_space<vmem>>, vector<128x64xf32>
    %c224 = arith.constant 224 : index
    %c0_16 = arith.constant 0 : index
    %43 = vector.load %arg3[%c224, %c0_16] : memref<392x32xf32, #tpu.memory_space<vmem>>, vector<64x32xf32>
    %cst_17 = arith.constant dense<0.000000e+00> : vector<128x32xf32>
    %44 = tpu.matmul %42, %43, %cst_17 {dimension_numbers = #tpu.dot_dimension_numbers<[1], [0], [0], [1], [0, 0, 1, 1], [], []>} : vector<128x64xf32>, vector<64x32xf32>, vector<128x32xf32> -> vector<128x32xf32>
    %45 = vector.extract_strided_slice %0 {offsets = [4, 0], sizes = [1, 32], strides = [1, 1]} : vector<8x32xf32> to vector<1x32xf32>
    %46 = vector.shape_cast %45 : vector<1x32xf32> to vector<32xf32>
    %47 = vector.shape_cast %46 : vector<32xf32> to vector<1x32xf32>
    %48 = vector.broadcast %47 : vector<1x32xf32> to vector<128x32xf32>
    %49 = arith.addf %44, %48 : vector<128x32xf32>
    %cst_18 = arith.constant 0.000000e+00 : f32
    %50 = vector.broadcast %cst_18 : f32 to vector<128x32xf32>
    %51 = arith.maximumf %49, %50 : vector<128x32xf32>
    %c288 = arith.constant 288 : index
    %c0_19 = arith.constant 0 : index
    %52 = vector.load %arg3[%c288, %c0_19] : memref<392x32xf32, #tpu.memory_space<vmem>>, vector<32x32xf32>
    %cst_20 = arith.constant dense<0.000000e+00> : vector<128x32xf32>
    %53 = tpu.matmul %51, %52, %cst_20 {dimension_numbers = #tpu.dot_dimension_numbers<[1], [0], [0], [1], [0, 0, 1, 1], [], []>} : vector<128x32xf32>, vector<32x32xf32>, vector<128x32xf32> -> vector<128x32xf32>
    %54 = vector.extract_strided_slice %0 {offsets = [5, 0], sizes = [1, 32], strides = [1, 1]} : vector<8x32xf32> to vector<1x32xf32>
    %55 = vector.shape_cast %54 : vector<1x32xf32> to vector<32xf32>
    %56 = vector.shape_cast %55 : vector<32xf32> to vector<1x32xf32>
    %57 = vector.broadcast %56 : vector<1x32xf32> to vector<128x32xf32>
    %58 = arith.addf %53, %57 : vector<128x32xf32>
    %cst_21 = arith.constant 0.000000e+00 : f32
    %59 = vector.broadcast %cst_21 : f32 to vector<128x32xf32>
    %60 = arith.maximumf %58, %59 : vector<128x32xf32>
    %c320 = arith.constant 320 : index
    %c0_22 = arith.constant 0 : index
    %61 = vector.load %arg3[%c320, %c0_22] : memref<392x32xf32, #tpu.memory_space<vmem>>, vector<32x32xf32>
    %cst_23 = arith.constant dense<0.000000e+00> : vector<128x32xf32>
    %62 = tpu.matmul %41, %61, %cst_23 {dimension_numbers = #tpu.dot_dimension_numbers<[1], [0], [0], [1], [0, 0, 1, 1], [], []>} : vector<128x32xf32>, vector<32x32xf32>, vector<128x32xf32> -> vector<128x32xf32>
    %c352 = arith.constant 352 : index
    %c0_24 = arith.constant 0 : index
    %63 = vector.load %arg3[%c352, %c0_24] : memref<392x32xf32, #tpu.memory_space<vmem>>, vector<32x32xf32>
    %cst_25 = arith.constant dense<0.000000e+00> : vector<128x32xf32>
    %64 = tpu.matmul %60, %63, %cst_25 {dimension_numbers = #tpu.dot_dimension_numbers<[1], [0], [0], [1], [0, 0, 1, 1], [], []>} : vector<128x32xf32>, vector<32x32xf32>, vector<128x32xf32> -> vector<128x32xf32>
    %65 = arith.addf %62, %64 : vector<128x32xf32>
    %66 = vector.extract_strided_slice %0 {offsets = [6, 0], sizes = [1, 32], strides = [1, 1]} : vector<8x32xf32> to vector<1x32xf32>
    %67 = vector.shape_cast %66 : vector<1x32xf32> to vector<32xf32>
    %68 = vector.shape_cast %67 : vector<32xf32> to vector<1x32xf32>
    %69 = vector.broadcast %68 : vector<1x32xf32> to vector<128x32xf32>
    %70 = arith.addf %65, %69 : vector<128x32xf32>
    %cst_26 = arith.constant 0.000000e+00 : f32
    %71 = vector.broadcast %cst_26 : f32 to vector<128x32xf32>
    %72 = arith.maximumf %70, %71 : vector<128x32xf32>
    %c384 = arith.constant 384 : index
    %c0_27 = arith.constant 0 : index
    %73 = vector.load %arg3[%c384, %c0_27] : memref<392x32xf32, #tpu.memory_space<vmem>>, vector<8x32xf32>
    %cst_28 = arith.constant dense<0.000000e+00> : vector<8x128xf32>
    %74 = tpu.matmul %73, %72, %cst_28 {dimension_numbers = #tpu.dot_dimension_numbers<[1], [1], [0], [0], [0, 0, 1, 0], [], []>} : vector<8x32xf32>, vector<128x32xf32>, vector<8x128xf32> -> vector<8x128xf32>
    %c0_29 = arith.constant 0 : index
    %c0_30 = arith.constant 0 : index
    %75 = vector.load %arg5[%c0_29, %c0_30] : memref<8x1xf32, #tpu.memory_space<vmem>>, vector<8x1xf32>
    %76 = vector.broadcast %75 : vector<8x1xf32> to vector<8x128xf32>
    %77 = arith.addf %74, %76 : vector<8x128xf32>
    %c0_31 = arith.constant 0 : index
    %c0_32 = arith.constant 0 : index
    %78 = vector.load %arg6[%c0_31, %c0_32] : memref<8x128xf32, #tpu.memory_space<vmem>>, vector<8x128xf32>
    tpu.vector_store %arg6[%c0_31, %c0_32], %77 {strides = array<i32>} : memref<8x128xf32, #tpu.memory_space<vmem>>, vector<8x128xf32>,
    return
  }
  func.func @transform_0(%arg0: i32) -> (i32, i32) {
    %c0_i32 = arith.constant 0 : i32
    %c0_i32_0 = arith.constant 0 : i32
    return %arg0, %c0_i32 : i32, i32
  }
  func.func @transform_1(%arg0: i32) -> (i32, i32) {
    %c0_i32 = arith.constant 0 : i32
    %c0_i32_0 = arith.constant 0 : i32
    return %arg0, %c0_i32 : i32, i32
  }
  func.func @transform_2(%arg0: i32) -> (i32, i32) {
    %c0_i32 = arith.constant 0 : i32
    %c0_i32_0 = arith.constant 0 : i32
    %c0_i32_1 = arith.constant 0 : i32
    return %c0_i32, %c0_i32_0 : i32, i32
  }
  func.func @transform_3(%arg0: i32) -> (i32, i32) {
    %c0_i32 = arith.constant 0 : i32
    %c0_i32_0 = arith.constant 0 : i32
    %c0_i32_1 = arith.constant 0 : i32
    return %c0_i32, %c0_i32_0 : i32, i32
  }
  func.func @transform_4(%arg0: i32) -> (i32, i32) {
    %c0_i32 = arith.constant 0 : i32
    %c0_i32_0 = arith.constant 0 : i32
    %c0_i32_1 = arith.constant 0 : i32
    return %c0_i32, %c0_i32_0 : i32, i32
  }
  func.func @transform_5(%arg0: i32) -> (i32, i32) {
    %c0_i32 = arith.constant 0 : i32
    %c0_i32_0 = arith.constant 0 : i32
    return %c0_i32, %arg0 : i32, i32
  }
}

</mosaic_0001>

<bundles_post_ra>
// kernel: full_model_forward.1
= control target key start
LH: loop header
LB: loop body
LE: loop exit
PB: predicated region body
PF: predicated region fallthrough
CT: control target
= control target key end

     0   :  { %s2081_s18 = smov 0   ;;  %s2792_s0 = inlined_call_operand.vmem [shape: f32[256,128], index: 0, kind: input, shape index: {}]   ;;  %s2793_s1 = inlined_call_operand.vmem [shape: f32[256,64], index: 1, kind: input, shape index: {}]   ;;  %s2794_s2 = inlined_call_operand.vmem [shape: f32[392,32], index: 2, kind: input, shape index: {}]   ;;  %s2795_s3 = inlined_call_operand.vmem [shape: f32[8,32], index: 3, kind: input, shape index: {}]   ;;  %s2796_s4 = inlined_call_operand.vmem [shape: f32[8,1], index: 4, kind: input, shape index: {}]   ;;  %s2797_s5 = inlined_call_operand.vmem [shape: f32[8,256], index: 5, kind: output, shape index: {}]  }
   0x1 LB: > { %s2087_s19 = sadd.s32 4294967295, %s2048_s18   ;;  %p1821_p0 = scmp.ge.s32.totalorder %s2048_s18, 1  ;;  %s2048_s18 = sphi %s2081_s18, %s15_s18  }
   0x2   : > { %p199_p1 = scmp.lt.s32.totalorder %s2048_s18, 3 }
   0x4   : > { %p200_p2 = pnand %p1821_p0, %p199_p1 }
   0x5   : > { %s1822_s11 = sshll.u32 (!%p200_p2), %s2087_s19, 4  ;;  %p243_p4 = scmp.lt.s32.totalorder (!%p200_p2), %s2087_s19, 1 }
   0x6   : > { %203 = sbr.rel (%p200_p2) target bundleno = 1357 (0x54d), region = 40  ;;  %p232_p3 = scmp.lt.s32.totalorder (!%p200_p2), %s1822_s11, 31 }
   0xb   : > { %v279_v0 = vld [vmem:[%s2794_s2 + $0x78] sm:$0xff]  ;;  %v278_v1 = vld [vmem:[%s2794_s2 + $0x70] sm:$0xff]  ;;  %v277_v2 = vld [vmem:[%s2794_s2 + $0x68] sm:$0xff]  ;;  %s2801_s11 = smov (!%p232_p3, %s1822_s11), 31  ;;  %vm351_vm0 = vcmask 261120   ;;  %s2803_s19 = smov (!%p243_p4, %s2087_s19), 1 }
   0xc   : > { %281 = vmatpush.msra.mxu0 %v279_v0  ;;  %v276_v3 = vld [vmem:[%s2794_s2 + $0x60] sm:$0xff]  ;;  %v275_v4 = vld [vmem:[%s2794_s2 + $0x58] sm:$0xff]  ;;  %v274_v5 = vld [vmem:[%s2794_s2 + $0x50] sm:$0xff]  ;;  %s1823_s24 = sshll.u32 %s2801_s11, 3  ;;  %s1826_s20 = sshll.u32 %s2803_s19, 3 }
   0xd   : > { %v273_v6 = vld [vmem:[%s2794_s2 + $0x48] sm:$0xff]  ;;  %v272_v7 = vld [vmem:[%s2794_s2 + $0x40] sm:$0xff]  ;;  %v271_v8 = vld [vmem:[%s2794_s2 + $0x38] sm:$0xff]  ;;  %s2145_s6 = scalar_lea.vmem %s2792_s0, %s1823_s24  ;;  %s2443_s23 = scalar_lea.vmem %s2793_s1, %s1823_s24 }
   0xe   : > { %282 = vmatpush.msra.mxu0 %v278_v1  ;;  %v270_v9 = vld [vmem:[%s2794_s2 + $0x30] sm:$0xff]  ;;  %v269_v10 = vld [vmem:[%s2794_s2 + $0x28] sm:$0xff]  ;;  %v268_v11 = vld [vmem:[%s2794_s2 + $0x20] sm:$0xff] }
   0xf   : > { %v267_v12 = vld [vmem:[%s2794_s2 + $0x18] sm:$0xff]  ;;  %v266_v13 = vld [vmem:[%s2794_s2 + $0x10] sm:$0xff]  ;;  %v265_v14 = vld [vmem:[%s2794_s2 + $0x8] sm:$0xff] }
  0x10   : > { %283 = vmatpush.msra.mxu0 %v277_v2  ;;  %v264_v15 = vld [vmem:[%s2794_s2] sm:$0xff]  ;;  %v249_v17 = vld [vmem:[%s2145_s6 + $0x8] sm:$0xff]  ;;  %v250_v18 = vld [vmem:[%s2145_s6 + $0x10] sm:$0xff] }
  0x11   : > { %v248_v16 = vld [vmem:[%s2145_s6] sm:$0xff]  ;;  %v251_v19 = vld [vmem:[%s2145_s6 + $0x18] sm:$0xff]  ;;  %v348_v21 = vld [vmem:[%s2794_s2 + $0x90] sm:$0xff] }
  0x12   : > { %284 = vmatpush.msra.mxu0 %v276_v3  ;;  %v349_v20 = vld [vmem:[%s2794_s2 + $0x98] sm:$0xff]  ;;  %v252_v22 = vld [vmem:[%s2145_s6 + $0x20] sm:$0xff]  ;;  %v253_v23 = vld [vmem:[%s2145_s6 + $0x28] sm:$0xff] }
  0x13   : > { %412 = vmatpush.msra.mxu1 %v349_v20  ;;  %v254_v24 = vld [vmem:[%s2145_s6 + $0x30] sm:$0xff]  ;;  %v255_v25 = vld [vmem:[%s2145_s6 + $0x38] sm:$0xff]  ;;  %v347_v26 = vld [vmem:[%s2794_s2 + $0x88] sm:$0xff] }
  0x14   : > { %285 = vmatpush.msra.mxu0 %v275_v4  ;;  %v346_v27 = vld [vmem:[%s2794_s2 + $0x80] sm:$0xff]  ;;  %v257_v29 = vld [vmem:[%s2145_s6 + $0x48] sm:$0xff]  ;;  %v258_v30 = vld [vmem:[%s2145_s6 + $0x50] sm:$0xff] }
  0x15   : > { %413 = vmatpush.msra.mxu1 %v348_v21  ;;  %v256_v28 = vld [vmem:[%s2145_s6 + $0x40] sm:$0xff]  ;;  %v259_v35 = vld [vmem:[%s2145_s6 + $0x58] sm:$0xff]  ;;  %v261_v41 = vld [vmem:[%s2145_s6 + $0x68] sm:$0xff] }
  0x16   : > { %286 = vmatpush.msra.mxu0 %v274_v5  ;;  %v247_v31 = vld [vmem:[%s2795_s3] sm:$0xff]  ;;  %v262_v44 = vld [vmem:[%s2145_s6 + $0x70] sm:$0xff]  ;;  %v263_v45 = vld [vmem:[%s2145_s6 + $0x78] sm:$0xff] }
  0x17   : > { %414 = vmatpush.msra.mxu1 %v347_v26  ;;  %v2176_v32 = vperm.slane %v247_v31, 0  ;;  %v260_v38 = vld [vmem:[%s2145_s6 + $0x60] sm:$0xff]  ;;  %v2238_v60 = vperm.slane %v247_v31, 1 }
  0x18   : > { %287 = vmatpush.msra.mxu0 %v273_v6 }
  0x19   : > { %415 = vmatpush.msra.mxu1 %v346_v27 }
  0x1a   : > { %288 = vmatpush.msra.mxu0 %v272_v7 }
  0x1c   : > { %289 = vmatpush.msra.mxu0 %v271_v8 }
  0x1e   : > { %290 = vmatpush.msra.mxu0 %v270_v9 }
  0x20   : > { %291 = vmatpush.msra.mxu0 %v269_v10 }
  0x22   : > { %292 = vmatpush.msra.mxu0 %v268_v11 }
  0x24   : > { %293 = vmatpush.msra.mxu0 %v267_v12 }
  0x26   : > { %294 = vmatpush.msra.mxu0 %v266_v13 }
  0x28   : > { %295 = vmatpush.msra.mxu0 %v265_v14 }
  0x2a   : > { %296 = vmatpush.msra.mxu0 %v264_v15 }
  0x2b   : > { %297 = vmatmul.f32.vlgmr.msra.gmra.mxu0 %v248_v16 }
  0x33   : > { %300 = vmatmul.f32.gmra.mxu0 %v249_v17 }
  0x3b   : > { %303 = vmatmul.f32.gmra.mxu0 %v250_v18 }
  0x43   : > { %306 = vmatmul.f32.gmra.mxu0 %v251_v19 }
  0x4b   : > { %309 = vmatmul.f32.gmra.mxu0 %v252_v22 }
  0x53   : > { %312 = vmatmul.f32.gmra.mxu0 %v253_v23 }
  0x5b   : > { %315 = vmatmul.f32.gmra.mxu0 %v254_v24 }
  0x63   : > { %318 = vmatmul.f32.gmra.mxu0 %v255_v25 }
  0x6b   : > { %321 = vmatmul.f32.gmra.mxu0 %v256_v28 }
  0x73   : > { %324 = vmatmul.f32.gmra.mxu0 %v257_v29 }
  0x7b   : > { %327 = vmatmul.f32.gmra.mxu0 %v258_v30 }
  0x83   : > { %330 = vmatmul.f32.gmra.mxu0 %v259_v35 }
  0x8b   : > { %333 = vmatmul.f32.gmra.mxu0 %v260_v38 }
  0x93   : > { %336 = vmatmul.f32.gmra.mxu0 %v261_v41 }
  0x9b   : > { %339 = vmatmul.f32.gmra.mxu0 %v262_v44 }
  0xa3   : > { %342 = vmatmul.f32.gmra.mxu0 %v263_v45 }
  0xa8   : > { %v298_v33 = vpop.f32.mrf.mxu0 }
  0xa9   : > { %v2179_v34 = vadd.f32 %v298_v33, %v2176_v32 }
  0xab   : > { %1827 = vmatmul.msk.f32.vlgmr.msra.gmra.mxu1 %vm351_vm0, %v2179_v34 }
  0xb0   : > { %v301_v36 = vpop.f32.mrf.mxu0 }
  0xb1   : > { %v2185_v37 = vadd.f32 %v301_v36, %v2176_v32 }
  0xb3   : > { %1828 = vmatmul.msk.f32.gmra.mxu1 %vm351_vm0, %v2185_v37 }
  0xb8   : > { %v304_v39 = vpop.f32.mrf.mxu0 }
  0xb9   : > { %v2191_v40 = vadd.f32 %v304_v39, %v2176_v32 }
  0xbb   : > { %1829 = vmatmul.msk.f32.gmra.mxu1 %vm351_vm0, %v2191_v40 }
  0xc0   : > { %v307_v42 = vpop.f32.mrf.mxu0 }
  0xc1   : > { %v2197_v43 = vadd.f32 %v307_v42, %v2176_v32 }
  0xc3   : > { %1830 = vmatmul.msk.f32.gmra.mxu1 %vm351_vm0, %v2197_v43 }
  0xc8   : > { %v310_v46 = vpop.f32.mrf.mxu0 }
  0xc9   : > { %v2204_v47 = vadd.f32 %v310_v46, %v2176_v32 }
  0xcb   : > { %1831 = vmatmul.msk.f32.gmra.mxu1 %vm351_vm0, %v2204_v47 }
  0xd0   : > { %v313_v48 = vpop.f32.mrf.mxu0 }
  0xd1   : > { %v2209_v49 = vadd.f32 %v313_v48, %v2176_v32 }
  0xd3   : > { %1832 = vmatmul.msk.f32.gmra.mxu1 %vm351_vm0, %v2209_v49 }
  0xd8   : > { %v316_v50 = vpop.f32.mrf.mxu0 }
  0xd9   : > { %v2214_v51 = vadd.f32 %v316_v50, %v2176_v32 }
  0xdb   : > { %1833 = vmatmul.msk.f32.gmra.mxu1 %vm351_vm0, %v2214_v51 }
  0xe0   : > { %v319_v52 = vpop.f32.mrf.mxu0 }
  0xe1   : > { %v2219_v53 = vadd.f32 %v319_v52, %v2176_v32 }
  0xe3   : > { %1834 = vmatmul.msk.f32.gmra.mxu1 %vm351_vm0, %v2219_v53 }
  0xe8   : > { %v322_v54 = vpop.f32.mrf.mxu0 }
  0xe9   : > { %v2224_v55 = vadd.f32 %v322_v54, %v2176_v32 }
  0xeb   : > { %1835 = vmatmul.msk.f32.gmra.mxu1 %vm351_vm0, %v2224_v55 }
  0xf0   : > { %v325_v56 = vpop.f32.mrf.mxu0 }
  0xf1   : > { %v2229_v57 = vadd.f32 %v325_v56, %v2176_v32 }
  0xf3   : > { %1836 = vmatmul.msk.f32.gmra.mxu1 %vm351_vm0, %v2229_v57 }
  0xf8   : > { %v328_v58 = vpop.f32.mrf.mxu0 }
  0xf9   : > { %v2234_v59 = vadd.f32 %v328_v58, %v2176_v32 }
  0xfb   : > { %1837 = vmatmul.msk.f32.gmra.mxu1 %vm351_vm0, %v2234_v59 }
 0x100   : > { %v331_v61 = vpop.f32.mrf.mxu0 }
 0x101   : > { %v2241_v63 = vadd.f32 %v331_v61, %v2176_v32 }
 0x103   : > { %1838 = vmatmul.msk.f32.gmra.mxu1 %vm351_vm0, %v2241_v63 }
 0x108   : > { %v334_v2 = vpop.f32.mrf.mxu0 }
 0x109   : > { %v2248_v4 = vadd.f32 %v334_v2, %v2176_v32 }
 0x10b   : > { %1839 = vmatmul.msk.f32.gmra.mxu1 %vm351_vm0, %v2248_v4 }
 0x110   : > { %v337_v7 = vpop.f32.mrf.mxu0 }
 0x111   : > { %v2255_v9 = vadd.f32 %v337_v7, %v2176_v32 }
 0x113   : > { %1840 = vmatmul.msk.f32.gmra.mxu1 %vm351_vm0, %v2255_v9 }
 0x118   : > { %v340_v12 = vpop.f32.mrf.mxu0 }
 0x119   : > { %v2262_v14 = vadd.f32 %v340_v12, %v2176_v32 }
 0x11b   : > { %1841 = vmatmul.msk.f32.gmra.mxu1 %vm351_vm0, %v2262_v14 }
 0x120   : > { %v343_v17 = vpop.f32.mrf.mxu0 }
 0x121   : > { %v2269_v19 = vadd.f32 %v343_v17, %v2176_v32 }
 0x123   : > { %1842 = vmatmul.msk.f32.gmra.mxu1 %vm351_vm0, %v2269_v19 }
 0x128   : > { %v417_v62 = vpop.f32.mrf.mxu1 }
 0x129   : > { %v418_v0 = vadd.f32 %v417_v62, %v2238_v60 }
 0x12b   : > { %v465_v1 = vsel %vm351_vm0, %v418_v0, -inf }
 0x12c   : > { %466 = vmax.xlane.f32.xlu0 %v465_v1 }
 0x130   : > { %v420_v3 = vpop.f32.mrf.mxu1 }
 0x131   : > { %v421_v5 = vadd.f32 %v420_v3, %v2238_v60 }
 0x133   : > { %v468_v6 = vsel %vm351_vm0, %v421_v5, -inf }
 0x134   : > { %469 = vmax.xlane.f32.xlu0 %v468_v6 }
 0x138   : > { %v423_v8 = vpop.f32.mrf.mxu1 }
 0x139   : > { %v424_v10 = vadd.f32 %v423_v8, %v2238_v60 }
 0x13b   : > { %v471_v11 = vsel %vm351_vm0, %v424_v10, -inf }
 0x13c   : > { %472 = vmax.xlane.f32.xlu1 %v471_v11 }
 0x140   : > { %v426_v13 = vpop.f32.mrf.mxu1 }
 0x141   : > { %v427_v15 = vadd.f32 %v426_v13, %v2238_v60 }
 0x143   : > { %v474_v16 = vsel %vm351_vm0, %v427_v15, -inf }
 0x144   : > { %475 = vmax.xlane.f32.xlu1 %v474_v16 }
 0x148   : > { %v429_v18 = vpop.f32.mrf.mxu1 }
 0x149   : > { %v430_v20 = vadd.f32 %v429_v18, %v2238_v60 }
 0x14b   : > { %v477_v21 = vsel %vm351_vm0, %v430_v20, -inf }
 0x14c   : > { %478 = vmax.xlane.f32.xlu2 %v477_v21 }
 0x150   : > { %v432_v22 = vpop.f32.mrf.mxu1 }
 0x151   : > { %v433_v23 = vadd.f32 %v432_v22, %v2238_v60 }
 0x153   : > { %v480_v24 = vsel %vm351_vm0, %v433_v23, -inf }
 0x154   : > { %481 = vmax.xlane.f32.xlu2 %v480_v24 }
 0x158   : > { %v435_v25 = vpop.f32.mrf.mxu1 }
 0x159   : > { %v2278_v26 = vadd.f32 %v435_v25, %v2238_v60 }
 0x15b   : > { %v483_v27 = vsel %vm351_vm0, %v2278_v26, -inf }
 0x15c   : > { %484 = vmax.xlane.f32.xlu0 %v483_v27 }
 0x160   : > { %v438_v28 = vpop.f32.mrf.mxu1 }
 0x161   : > { %v2283_v29 = vadd.f32 %v438_v28, %v2238_v60 }
 0x163   : > { %v486_v30 = vsel %vm351_vm0, %v2283_v29, -inf }
 0x164   : > { %487 = vmax.xlane.f32.xlu2 %v486_v30 }
 0x168   : > { %v441_v31 = vpop.f32.mrf.mxu1 }
 0x169   : > { %v2292_v45 = vadd.f32 %v441_v31, %v2238_v60 }
 0x16b   : > { %v489_v52 = vsel %vm351_vm0, %v2292_v45, -inf }
 0x170   : > { %v444_v36 = vpop.f32.mrf.mxu1 }
 0x171   : > { %v2301_v61 = vadd.f32 %v444_v36, %v2238_v60 }
 0x173   : > { %v492_v1 = vsel %vm351_vm0, %v2301_v61, -inf }
 0x178   : > { %v447_v50 = vpop.f32.mrf.mxu1 }
 0x179   : > { %v2310_v7 = vadd.f32 %v447_v50, %v2238_v60 }
 0x17b   : > { %v495_v11 = vsel %vm351_vm0, %v2310_v7, -inf }
 0x19f   : > { %v467_v32 = vpop.xlane.xlu0 %466 }
 0x1a0   : > { %v513_v33 = vsub.f32 %v418_v0, %v467_v32 }
 0x1a2   : > { %v529_v35 = vmul.f32 1.442695, %v513_v33 }
 0x1a4   : > { %1977 = vpow2.f32 %v529_v35 }
 0x1a7   : > { %v470_v38 = vpop.xlane.xlu0 %469 }
 0x1a8   : > { %v514_v39 = vsub.f32 %v421_v5, %v470_v38  ;;  %v450_v5 = vpop.f32.mrf.mxu1 }
 0x1a9   : > { %v2319_v17 = vadd.f32 %v450_v5, %v2238_v60  ;;  %v865_v5 = vld [vmem:[%s2794_s2 + $0xa0] sm:$0xff] }
 0x1aa   : > { %v2287_v41 = vpop.eup %1977  ;;  %v531_v42 = vmul.f32 1.442695, %v514_v39 }
 0x1ab   : > { %v561_v44 = vsel %vm351_vm0, %v2287_v41, 0.0 }
 0x1ac   : > { %1979 = vpow2.f32 %v531_v42  ;;  %562 = vadd.xlane.f32.xlu1 %v561_v44 }
 0x1af   : > { %v473_v46 = vpop.xlane.xlu1 %472 }
 0x1b0   : > { %v515_v48 = vsub.f32 %v424_v10, %v473_v46  ;;  %v453_v16 = vpop.f32.mrf.mxu1 }
 0x1b1   : > { %v2328_v27 = vadd.f32 %v453_v16, %v2238_v60 }
 0x1b2   : > { %v2296_v54 = vpop.eup %1979  ;;  %v533_v56 = vmul.f32 1.442695, %v515_v48 }
 0x1b3   : > { %v564_v58 = vsel %vm351_vm0, %v2296_v54, 0.0 }
 0x1b4   : > { %1981 = vpow2.f32 %v533_v56  ;;  %490 = vmax.xlane.f32.xlu1 %v489_v52  ;;  %565 = vadd.xlane.f32.xlu0 %v564_v58 }
 0x1b7   : > { %v476_v62 = vpop.xlane.xlu1 %475 }
 0x1b8   : > { %v516_v0 = vsub.f32 %v427_v15, %v476_v62  ;;  %v456_v28 = vpop.f32.mrf.mxu1 }
 0x1b9   : > { %v2338_v36 = vadd.f32 %v456_v28, %v2238_v60  ;;  %v1140_v28 = vld [vmem:[%s2794_s2 + $0x118] sm:$0xff] }
 0x1ba   : > { %v2305_v2 = vpop.eup %1981  ;;  %v535_v3 = vmul.f32 1.442695, %v516_v0  ;;  %1199 = vmatpush.msrb.mxu1 %v1140_v28 }
 0x1bb   : > { %v567_v6 = vsel %vm351_vm0, %v2305_v2, 0.0 }
 0x1bc   : > { %1983 = vpow2.f32 %v535_v3  ;;  %568 = vadd.xlane.f32.xlu2 %v567_v6  ;;  %493 = vmax.xlane.f32.xlu0 %v492_v1  ;;  %v868_v1 = vld [vmem:[%s2794_s2 + $0xb8] sm:$0xff]  ;;  %v867_v3 = vld [vmem:[%s2794_s2 + $0xb0] sm:$0xff] }
 0x1bd   : > { %930 = vmatpush.msra.mxu2 %v868_v1  ;;  %1958 = vmatpush.msra.mxu3 %v868_v1 }
 0x1bf   : > { %v479_v8 = vpop.xlane.xlu2 %478  ;;  %931 = vmatpush.msra.mxu2 %v867_v3  ;;  %1959 = vmatpush.msra.mxu3 %v867_v3 }
 0x1c0   : > { %v517_v10 = vsub.f32 %v430_v20, %v479_v8  ;;  %v498_v20 = vsel %vm351_vm0, %v2319_v17, -inf  ;;  %v459_v42 = vpop.f32.mrf.mxu1 }
 0x1c1   : > { %v2348_v50 = vadd.f32 %v459_v42, %v2238_v60 }
 0x1c2   : > { %v2314_v12 = vpop.eup %1983  ;;  %v537_v13 = vmul.f32 1.442695, %v517_v10 }
 0x1c3   : > { %v570_v15 = vsel %vm351_vm0, %v2314_v12, 0.0  ;;  %v507_v52 = vsel %vm351_vm0, %v2348_v50, -inf }
 0x1c4   : > { %1985 = vpow2.f32 %v537_v13  ;;  %496 = vmax.xlane.f32.xlu2 %v495_v11  ;;  %571 = vadd.xlane.f32.xlu1 %v570_v15 }
 0x1c7   : > { %v482_v18 = vpop.xlane.xlu2 %481 }
 0x1c8   : > { %v518_v21 = vsub.f32 %v433_v23, %v482_v18  ;;  %v501_v23 = vsel %vm351_vm0, %v2328_v27, -inf  ;;  %v462_v56 = vpop.f32.mrf.mxu1 }
 0x1c9   : > { %v2357_v62 = vadd.f32 %v462_v56, %v2238_v60  ;;  %v866_v60 = vld [vmem:[%s2794_s2 + $0xa8] sm:$0xff] }
 0x1ca   : > { %v2323_v22 = vpop.eup %1985  ;;  %v539_v24 = vmul.f32 1.442695, %v518_v21  ;;  %932 = vmatpush.msra.mxu2 %v866_v60  ;;  %1960 = vmatpush.msra.mxu3 %v866_v60 }
 0x1cb   : > { %v573_v25 = vsel %vm351_vm0, %v2323_v22, 0.0  ;;  %v510_v0 = vsel %vm351_vm0, %v2357_v62, -inf }
 0x1cc   : > { %1987 = vpow2.f32 %v539_v24  ;;  %499 = vmax.xlane.f32.xlu1 %v498_v20  ;;  %574 = vadd.xlane.f32.xlu0 %v573_v25 }
 0x1cd   : > { %933 = vmatpush.msra.mxu2 %v865_v5  ;;  %1961 = vmatpush.msra.mxu3 %v865_v5 }
 0x1cf   : > { %v485_v30 = vpop.xlane.xlu0 %484 }
 0x1d0   : > { %v519_v31 = vsub.f32 %v2278_v26, %v485_v30  ;;  %v504_v26 = vsel %vm351_vm0, %v2338_v36, -inf }
 0x1d2   : > { %v2333_v32 = vpop.eup %1987  ;;  %v541_v33 = vmul.f32 1.442695, %v519_v31 }
 0x1d3   : > { %v576_v35 = vsel %vm351_vm0, %v2333_v32, 0.0 }
 0x1d4   : > { %1989 = vpow2.f32 %v541_v33  ;;  %577 = vadd.xlane.f32.xlu2 %v576_v35  ;;  %502 = vmax.xlane.f32.xlu0 %v501_v23 }
 0x1d7   : > { %v488_v38 = vpop.xlane.xlu2 %487 }
 0x1d8   : > { %v520_v39 = vsub.f32 %v2283_v29, %v488_v38 }
 0x1da   : > { %v2343_v44 = vpop.eup %1989  ;;  %v543_v46 = vmul.f32 1.442695, %v520_v39 }
 0x1db   : > { %v579_v48 = vsel %vm351_vm0, %v2343_v44, 0.0 }
 0x1dc   : > { %1991 = vpow2.f32 %v543_v46  ;;  %505 = vmax.xlane.f32.xlu2 %v504_v26  ;;  %580 = vadd.xlane.f32.xlu1 %v579_v48 }
 0x1e2   : > { %v2352_v29 = vpop.eup %1991 }
 0x1e3   : > { %v582_v58 = vsel %vm351_vm0, %v2352_v29, 0.0 }
 0x1e4   : > { %583 = vadd.xlane.f32.xlu0 %v582_v58  ;;  %508 = vmax.xlane.f32.xlu1 %v507_v52 }
 0x1ec   : > { %511 = vmax.xlane.f32.xlu0 %v510_v0 }
 0x21f   : > { %v563_v6 = vpop.xlane.xlu1 %562 }
 0x220   : > { %1993 = vrcp.f32 %v563_v6  ;;  %v620_v20 = vand.u32 2147483648, %v563_v6  ;;  %v618_v24 = vand.u32 2147483647, %v563_v6  ;;  %vm614_vm2 = vweird.f32 %v563_v6 }
 0x222   : > { %v621_v31 = vor.u32 1.1754944e-38, %v620_v20  ;;  %vm619_vm4 = vcmp.eq.f32.partialorder %v618_v24, 8.507059e+37 }
 0x226   : > { %v1994_v8 = vpop.eup %1993 }
 0x227   : > { %v610_v10 = vmul.f32 %v1994_v8, %v563_v6  ;;  %v491_v11 = vpop.xlane.xlu1 %490  ;;  %v566_v13 = vpop.xlane.xlu0 %565  ;;  %vm615_vm1 = vweird.f32 %v1994_v8 }
 0x228   : > { %v521_v15 = vsub.f32 %v2292_v45, %v491_v11  ;;  %1995 = vrcp.f32 %v566_v13  ;;  %vm616_vm3 = vmor %vm614_vm2, %vm615_vm1  ;;  %v635_v46 = vand.u32 2147483648, %v566_v13  ;;  %v633_v0 = vand.u32 2147483647, %v566_v13 }
 0x229   : > { %v611_v16 = vsub.f32 1.0, %v610_v10  ;;  %vm629_vm6 = vweird.f32 %v566_v13 }
 0x22a   : > { %v545_v18 = vmul.f32 1.442695, %v521_v15  ;;  %v636_v60 = vor.u32 1.1754944e-38, %v635_v46  ;;  %vm634_vm8 = vcmp.eq.f32.partialorder %v633_v0, 8.507059e+37 }
 0x22b   : > { %v612_v21 = vmul.f32 %v1994_v8, %v611_v16 }
 0x22c   : > { %1997 = vpow2.f32 %v545_v18 }
 0x22d   : > { %v613_v25 = vadd.f32 %v1994_v8, %v612_v21 }
 0x22e   : > { %v1996_v30 = vpop.eup %1995 }
 0x22f   : > { %v625_v23 = vmul.f32 %v1996_v30, %v566_v13  ;;  %v569_v45 = vpop.xlane.xlu2 %568  ;;  %v494_v33 = vpop.xlane.xlu0 %493  ;;  %v617_v35 = vsel %vm616_vm3, %v1994_v8, %v613_v25  ;;  %vm630_vm5 = vweird.f32 %v1996_v30 }
 0x230   : > { %1999 = vrcp.f32 %v569_v45  ;;  %v522_v39 = vsub.f32 %v2301_v61, %v494_v33  ;;  %v622_v42 = vsel %vm619_vm4, %v621_v31, %v617_v35  ;;  %vm631_vm7 = vmor %vm629_vm6, %vm630_vm5  ;;  %v650_v21 = vand.u32 2147483648, %v569_v45 }
 0x231   : > { %v626_v38 = vsub.f32 1.0, %v625_v23  ;;  %v623_v48 = vmul.f32 %v2287_v41, %v622_v42  ;;  %v648_v20 = vand.u32 2147483647, %v569_v45  ;;  %vm644_vm10 = vweird.f32 %v569_v45 }
 0x232   : > { %v2378_v26 = vpop.eup %1997  ;;  %v547_v56 = vmul.f32 1.442695, %v522_v39 }
 0x233   : > { %v627_v52 = vmul.f32 %v1996_v30, %v626_v38  ;;  %v585_v58 = vsel %vm351_vm0, %v2378_v26, 0.0  ;;  %v849_v1 = vmul.f32 %v623_v48, %v2179_v34  ;;  %vm649_vm12 = vcmp.eq.f32.partialorder %v648_v20, 8.507059e+37 }
 0x234   : > { %586 = vadd.xlane.f32.xlu2 %v585_v58  ;;  %2001 = vpow2.f32 %v547_v56 }
 0x235   : > { %v628_v3 = vadd.f32 %v1996_v30, %v627_v52  ;;  %1843 = vmatmul.msk.f32.vlgmr.msra.gmra.mxu2 %vm351_vm0, %v849_v1  ;;  %v1138_v1 = vld [vmem:[%s2794_s2 + $0x108] sm:$0xff] }
 0x236   : > { %v2000_v61 = vpop.eup %1999 }
 0x237   : > { %v640_v5 = vmul.f32 %v2000_v61, %v569_v45  ;;  %v497_v41 = vpop.xlane.xlu2 %496  ;;  %v572_v6 = vpop.xlane.xlu1 %571  ;;  %v632_v8 = vsel %vm631_vm7, %v1996_v30, %v628_v3  ;;  %vm645_vm9 = vweird.f32 %v2000_v61  ;;  %v651_v30 = vor.u32 1.1754944e-38, %v650_v21 }
 0x238   : > { %v523_v10 = vsub.f32 %v2310_v7, %v497_v41  ;;  %2003 = vrcp.f32 %v572_v6  ;;  %v637_v15 = vsel %vm634_vm8, %v636_v60, %v632_v8  ;;  %v1139_v7 = vld [vmem:[%s2794_s2 + $0x110] sm:$0xff]  ;;  %vm646_vm11 = vmor %vm644_vm10, %vm645_vm9  ;;  %v665_v52 = vand.u32 2147483648, %v572_v6 }
 0x239   : > { %v641_v11 = vsub.f32 1.0, %v640_v5  ;;  %v638_v34 = vmul.f32 %v2296_v54, %v637_v15  ;;  %1200 = vmatpush.msrb.mxu1 %v1139_v7  ;;  %v663_v58 = vand.u32 2147483647, %v572_v6  ;;  %vm659_vm14 = vweird.f32 %v572_v6 }
 0x23a   : > { %v549_v16 = vmul.f32 1.442695, %v523_v10  ;;  %v2387_v13 = vpop.eup %2001  ;;  %vm1142_vm8 = vcmask 523264  }
 0x23b   : > { %v642_v18 = vmul.f32 %v2000_v61, %v641_v11  ;;  %v588_v24 = vsel %vm351_vm0, %v2387_v13, 0.0  ;;  %v850_v25 = vmul.f32 %v638_v34, %v2185_v37  ;;  %1201 = vmatpush.msrb.mxu1 %v1138_v1  ;;  %vm664_vm1 = vcmp.eq.f32.partialorder %v663_v58, 8.507059e+37  ;;  %v1133_v58 = vld [vmem:[%s2794_s2 + $0xe0] sm:$0xff] }
 0x23c   : > { %2005 = vpow2.f32 %v549_v16  ;;  %589 = vadd.xlane.f32.xlu1 %v588_v24 }
 0x23d   : > { %v643_v28 = vadd.f32 %v2000_v61, %v642_v18  ;;  %1844 = vmatmul.msk.f32.gmra.mxu2 %vm351_vm0, %v850_v25 }
 0x23e   : > { %v2004_v54 = vpop.eup %2003 }
 0x23f   : > { %v655_v31 = vmul.f32 %v2004_v54, %v572_v6  ;;  %v500_v23 = vpop.xlane.xlu1 %499  ;;  %v575_v33 = vpop.xlane.xlu0 %574  ;;  %v647_v35 = vsel %vm646_vm11, %v2000_v61, %v643_v28  ;;  %vm660_vm13 = vweird.f32 %v2004_v54  ;;  %v1136_v28 = vld [vmem:[%s2794_s2 + $0xf8] sm:$0xff] }
 0x240   : > { %v524_v37 = vsub.f32 %v2319_v17, %v500_v23  ;;  %2007 = vrcp.f32 %v575_v33  ;;  %v652_v38 = vsel %vm649_vm12, %v651_v30, %v647_v35  ;;  %vm661_vm15 = vmor %vm659_vm14, %vm660_vm13  ;;  %v680_v11 = vand.u32 2147483648, %v575_v33 }
 0x241   : > { %v656_v45 = vsub.f32 1.0, %v655_v31  ;;  %v653_v46 = vmul.f32 %v2305_v2, %v652_v38  ;;  %v666_v2 = vor.u32 1.1754944e-38, %v665_v52  ;;  %v678_v21 = vand.u32 2147483647, %v575_v33 }
 0x242   : > { %v2397_v39 = vpop.eup %2005  ;;  %v551_v42 = vmul.f32 1.442695, %v524_v37  ;;  %vm674_vm3 = vweird.f32 %v575_v33 }
 0x243   : > { %v657_v48 = vmul.f32 %v2004_v54, %v656_v45  ;;  %v591_v56 = vsel %vm351_vm0, %v2397_v39, 0.0  ;;  %v851_v0 = vmul.f32 %v653_v46, %v2191_v40  ;;  %vm679_vm5 = vcmp.eq.f32.partialorder %v678_v21, 8.507059e+37 }
 0x244   : > { %2009 = vpow2.f32 %v551_v42  ;;  %592 = vadd.xlane.f32.xlu2 %v591_v56 }
 0x245   : > { %v658_v17 = vadd.f32 %v2004_v54, %v657_v48  ;;  %1845 = vmatmul.msk.f32.gmra.mxu2 %vm351_vm0, %v851_v0 }
 0x246   : > { %v2008_v3 = vpop.eup %2007 }
 0x247   : > { %v670_v61 = vmul.f32 %v2008_v3, %v575_v33  ;;  %v2407_v60 = vpop.xlane.xlu2 %577  ;;  %v503_v5 = vpop.xlane.xlu0 %502  ;;  %v662_v41 = vsel %vm661_vm15, %v2004_v54, %v658_v17  ;;  %vm675_vm2 = vweird.f32 %v2008_v3  ;;  %v1135_v33 = vld [vmem:[%s2794_s2 + $0xf0] sm:$0xff]  ;;  %v1117_v17 = vld [vmem:[%s2443_s23] sm:$0xff] }
 0x248   : > { %2011 = vrcp.f32 %v2407_v60  ;;  %v525_v6 = vsub.f32 %v2328_v27, %v503_v5  ;;  %v667_v8 = vsel %vm664_vm1, %v666_v2, %v662_v41  ;;  %vm2417_vm4 = vmor %vm674_vm3, %vm675_vm2  ;;  %v695_v48 = vand.u32 2147483648, %v2407_v60 }
 0x249   : > { %v671_v40 = vsub.f32 1.0, %v670_v61  ;;  %v668_v15 = vmul.f32 %v2314_v12, %v667_v8  ;;  %v1137_v12 = vld [vmem:[%s2794_s2 + $0x100] sm:$0xff]  ;;  %v693_v52 = vand.u32 2147483647, %v2407_v60  ;;  %vm689_vm7 = vweird.f32 %v2407_v60 }
 0x24a   : > { %v2411_v10 = vpop.eup %2009  ;;  %v553_v34 = vmul.f32 1.442695, %v525_v6  ;;  %1202 = vmatpush.msrb.mxu1 %v1137_v12 }
 0x24b   : > { %v672_v16 = vmul.f32 %v2008_v3, %v671_v40  ;;  %v594_v18 = vsel %vm351_vm0, %v2411_v10, 0.0  ;;  %v852_v20 = vmul.f32 %v668_v15, %v2197_v43  ;;  %v681_v43 = vor.u32 1.1754944e-38, %v680_v11 }
 0x24c   : > { %595 = vadd.xlane.f32.xlu0 %v594_v18  ;;  %2013 = vpow2.f32 %v553_v34  ;;  %1203 = vmatpush.msrb.mxu1 %v1136_v28  ;;  %vm694_vm10 = vcmp.eq.f32.partialorder %v693_v52, 8.507059e+37 }
 0x24d   : > { %v673_v24 = vadd.f32 %v2008_v3, %v672_v16  ;;  %1846 = vmatmul.msk.f32.gmra.mxu2 %vm351_vm0, %v852_v20  ;;  %v1118_v20 = vld [vmem:[%s2443_s23 + $0x8] sm:$0xff] }
 0x24e   : > { %v2012_v27 = vpop.eup %2011  ;;  %1204 = vmatpush.msrb.mxu1 %v1135_v33 }
 0x24f   : > { %v685_v7 = vmul.f32 %v2012_v27, %v2407_v60  ;;  %v506_v54 = vpop.xlane.xlu2 %505  ;;  %v2429_v30 = vpop.xlane.xlu1 %580  ;;  %v677_v31 = vsel %vm2417_vm4, %v2008_v3, %v673_v24  ;;  %vm690_vm6 = vweird.f32 %v2012_v27  ;;  %v696_v3 = vor.u32 1.1754944e-38, %v695_v48 }
 0x250   : > { %v526_v23 = vsub.f32 %v2338_v36, %v506_v54  ;;  %2015 = vrcp.f32 %v2429_v30  ;;  %v682_v37 = vsel %vm679_vm5, %v681_v43, %v677_v31  ;;  %v1134_v36 = vld [vmem:[%s2794_s2 + $0xe8] sm:$0xff]  ;;  %vm691_vm9 = vmor %vm689_vm7, %vm690_vm6  ;;  %v710_v8 = vand.u32 2147483648, %v2429_v30 }
 0x251   : > { %v686_v35 = vsub.f32 1.0, %v685_v7  ;;  %v683_v38 = vmul.f32 %v2323_v22, %v682_v37  ;;  %1205 = vmatpush.msrb.mxu1 %v1134_v36  ;;  %v708_v34 = vand.u32 2147483647, %v2429_v30  ;;  %vm704_vm12 = vweird.f32 %v2429_v30 }
 0x252   : > { %v555_v45 = vmul.f32 1.442695, %v526_v23  ;;  %v2449_v42 = vpop.eup %2013 }
 0x253   : > { %v687_v46 = vmul.f32 %v2012_v27, %v686_v35  ;;  %v597_v56 = vsel %vm351_vm0, %v2449_v42, 0.0  ;;  %v853_v22 = vmul.f32 %v683_v38, %v2204_v47  ;;  %1206 = vmatpush.msrb.mxu1 %v1133_v58  ;;  %vm709_vm14 = vcmp.eq.f32.partialorder %v708_v34, 8.507059e+37  ;;  %v1123_v58 = vld [vmem:[%s2443_s23 + $0x30] sm:$0xff] }
 0x254   : > { %2017 = vpow2.f32 %v555_v45  ;;  %598 = vadd.xlane.f32.xlu1 %v597_v56  ;;  %1875 = vmatmul.msk.f32.vlgmr.msrb.gmra.mxu1 %vm1142_vm8, %v1117_v17  ;;  %v1119_v45 = vld [vmem:[%s2443_s23 + $0x10] sm:$0xff]  ;;  %v1120_v56 = vld [vmem:[%s2443_s23 + $0x18] sm:$0xff]  ;;  %v1126_v17 = vld [vmem:[%s2443_s23 + $0x48] sm:$0xff] }
 0x255   : > { %v688_v0 = vadd.f32 %v2012_v27, %v687_v46  ;;  %1847 = vmatmul.msk.f32.gmra.mxu2 %vm351_vm0, %v853_v22  ;;  %v1121_v22 = vld [vmem:[%s2443_s23 + $0x20] sm:$0xff] }
 0x256   : > { %v2016_v1 = vpop.eup %2015 }
 0x257   : > { %v700_v2 = vmul.f32 %v2016_v1, %v2429_v30  ;;  %v509_v47 = vpop.xlane.xlu1 %508  ;;  %v584_v61 = vpop.xlane.xlu0 %583  ;;  %v692_v5 = vsel %vm691_vm9, %v2012_v27, %v688_v0  ;;  %vm705_vm11 = vweird.f32 %v2016_v1  ;;  %v711_v27 = vor.u32 1.1754944e-38, %v710_v8  ;;  %v1124_v0 = vld [vmem:[%s2443_s23 + $0x38] sm:$0xff] }
 0x258   : > { %v527_v41 = vsub.f32 %v2348_v50, %v509_v47  ;;  %2019 = vrcp.f32 %v584_v61  ;;  %v697_v40 = vsel %vm694_vm10, %v696_v3, %v692_v5  ;;  %vm706_vm13 = vmor %vm704_vm12, %vm705_vm11  ;;  %v723_v30 = vand.u32 2147483647, %v584_v61  ;;  %v1127_v3 = vld [vmem:[%s2443_s23 + $0x50] sm:$0xff]  ;;  %v1128_v8 = vld [vmem:[%s2443_s23 + $0x58] sm:$0xff] }
 0x259   : > { %v701_v60 = vsub.f32 1.0, %v700_v2  ;;  %v698_v15 = vmul.f32 %v2333_v32, %v697_v40  ;;  %v725_v31 = vand.u32 2147483648, %v584_v61  ;;  %vm719_vm1 = vweird.f32 %v584_v61 }
 0x25a   : > { %v2466_v6 = vpop.eup %2017  ;;  %v557_v11 = vmul.f32 1.442695, %v527_v41  ;;  %vm724_vm3 = vcmp.eq.f32.partialorder %v723_v30, 8.507059e+37 }
 0x25b   : > { %v702_v16 = vmul.f32 %v2016_v1, %v701_v60  ;;  %v600_v50 = vsel %vm351_vm0, %v2466_v6, 0.0  ;;  %v854_v18 = vmul.f32 %v698_v15, %v2209_v49  ;;  %v1275_v15 = vld [vmem:[%s2794_s2 + $0x138] sm:$0xff] }
 0x25c   : > { %2021 = vpow2.f32 %v557_v11  ;;  %601 = vadd.xlane.f32.xlu2 %v600_v50  ;;  %1876 = vmatmul.msk.f32.gmra.mxu1 %vm1142_vm8, %v1118_v20 }
 0x25d   : > { %v703_v21 = vadd.f32 %v2016_v1, %v702_v16  ;;  %1848 = vmatmul.msk.f32.gmra.mxu2 %vm351_vm0, %v854_v18 }
 0x25e   : > { %v2020_v24 = vpop.eup %2019  ;;  %1337 = vmatpush.msrb.mxu2 %v1275_v15 }
 0x25f   : > { %v715_v32 = vmul.f32 %v2020_v24, %v584_v61  ;;  %v512_v25 = vpop.xlane.xlu0 %511  ;;  %v707_v12 = vsel %vm706_vm13, %v2016_v1, %v703_v21  ;;  %vm720_vm15 = vweird.f32 %v2020_v24 }
 0x260   : > { %v528_v28 = vsub.f32 %v2357_v62, %v512_v25  ;;  %v712_v43 = vsel %vm709_vm14, %v711_v27, %v707_v12  ;;  %vm721_vm2 = vmor %vm719_vm1, %vm720_vm15 }
 0x261   : > { %v716_v49 = vsub.f32 1.0, %v715_v32  ;;  %v713_v7 = vmul.f32 %v2343_v44, %v712_v43  ;;  %v726_v44 = vor.u32 1.1754944e-38, %v725_v31 }
 0x262   : > { %v2480_v54 = vpop.eup %2021  ;;  %v559_v23 = vmul.f32 1.442695, %v528_v28  ;;  %v1129_v28 = vld [vmem:[%s2443_s23 + $0x60] sm:$0xff] }
 0x263   : > { %v717_v33 = vmul.f32 %v2020_v24, %v716_v49  ;;  %v603_v35 = vsel %vm351_vm0, %v2480_v54, 0.0  ;;  %v855_v37 = vmul.f32 %v713_v7, %v2214_v51 }
 0x264   : > { %2023 = vpow2.f32 %v559_v23  ;;  %604 = vadd.xlane.f32.xlu0 %v603_v35  ;;  %1877 = vmatmul.msk.f32.gmra.mxu1 %vm1142_vm8, %v1119_v45 }
 0x265   : > { %v718_v62 = vadd.f32 %v2020_v24, %v717_v33  ;;  %1849 = vmatmul.msk.f32.gmra.mxu2 %vm351_vm0, %v855_v37 }
 0x267   : > { %v722_v38 = vsel %vm721_vm2, %v2020_v24, %v718_v62 }
 0x268   : > { %v727_v36 = vsel %vm724_vm3, %v726_v44, %v722_v38  ;;  %v1130_v44 = vld [vmem:[%s2443_s23 + $0x68] sm:$0xff] }
 0x269   : > { %v728_v51 = vmul.f32 %v2352_v29, %v727_v36  ;;  %v1122_v29 = vld [vmem:[%s2443_s23 + $0x28] sm:$0xff] }
 0x26a   : > { %v2489_v46 = vpop.eup %2023 }
 0x26b   : > { %v606_v48 = vsel %vm351_vm0, %v2489_v46, 0.0  ;;  %v856_v52 = vmul.f32 %v728_v51, %v2219_v53  ;;  %v1125_v53 = vld [vmem:[%s2443_s23 + $0x40] sm:$0xff] }
 0x26c   : > { %607 = vadd.xlane.f32.xlu1 %v606_v48  ;;  %1878 = vmatmul.msk.f32.gmra.mxu1 %vm1142_vm8, %v1120_v56 }
 0x26d   : > { %1850 = vmatmul.msk.f32.gmra.mxu2 %vm351_vm0, %v856_v52 }
 0x274   : > { %1879 = vmatmul.msk.f32.gmra.mxu1 %vm1142_vm8, %v1121_v22 }
 0x27c   : > { %1880 = vmatmul.msk.f32.gmra.mxu1 %vm1142_vm8, %v1122_v29 }
 0x284   : > { %1881 = vmatmul.msk.f32.gmra.mxu1 %vm1142_vm8, %v1123_v58 }
 0x28c   : > { %1882 = vmatmul.msk.f32.gmra.mxu1 %vm1142_vm8, %v1124_v0 }
 0x294   : > { %1883 = vmatmul.msk.f32.gmra.mxu1 %vm1142_vm8, %v1125_v53 }
 0x29c   : > { %1884 = vmatmul.msk.f32.gmra.mxu1 %vm1142_vm8, %v1126_v17 }
 0x2a4   : > { %1885 = vmatmul.msk.f32.gmra.mxu1 %vm1142_vm8, %v1127_v3 }
 0x2a7   : > { %v587_v1 = vpop.xlane.xlu2 %586 }
 0x2a8   : > { %2025 = vrcp.f32 %v587_v1  ;;  %v740_v60 = vand.u32 2147483648, %v587_v1  ;;  %v738_v40 = vand.u32 2147483647, %v587_v1  ;;  %vm734_vm5 = vweird.f32 %v587_v1 }
 0x2aa   : > { %v741_v34 = vor.u32 1.1754944e-38, %v740_v60  ;;  %vm739_vm7 = vcmp.eq.f32.partialorder %v738_v40, 8.507059e+37  ;;  %v1131_v40 = vld [vmem:[%s2443_s23 + $0x70] sm:$0xff] }
 0x2ac   : > { %1886 = vmatmul.msk.f32.gmra.mxu1 %vm1142_vm8, %v1128_v8 }
 0x2ae   : > { %v2026_v2 = vpop.eup %2025 }
 0x2af   : > { %v730_v47 = vmul.f32 %v2026_v2, %v587_v1  ;;  %v590_v61 = vpop.xlane.xlu1 %589  ;;  %vm735_vm4 = vweird.f32 %v2026_v2 }
 0x2b0   : > { %2027 = vrcp.f32 %v590_v61  ;;  %vm736_vm6 = vmor %vm734_vm5, %vm735_vm4  ;;  %v755_v25 = vand.u32 2147483648, %v590_v61  ;;  %v753_v43 = vand.u32 2147483647, %v590_v61  ;;  %vm749_vm10 = vweird.f32 %v590_v61 }
 0x2b1   : > { %v731_v5 = vsub.f32 1.0, %v730_v47 }
 0x2b2   : > { %v756_v23 = vor.u32 1.1754944e-38, %v755_v25  ;;  %vm754_vm12 = vcmp.eq.f32.partialorder %v753_v43, 8.507059e+37 }
 0x2b3   : > { %v732_v41 = vmul.f32 %v2026_v2, %v731_v5 }
 0x2b4   : > { %1887 = vmatmul.msk.f32.gmra.mxu1 %vm1142_vm8, %v1129_v28 }
 0x2b5   : > { %v733_v11 = vadd.f32 %v2026_v2, %v732_v41 }
 0x2b6   : > { %v2028_v16 = vpop.eup %2027 }
 0x2b7   : > { %v593_v50 = vpop.xlane.xlu2 %592  ;;  %v737_v18 = vsel %vm736_vm6, %v2026_v2, %v733_v11  ;;  %v745_v21 = vmul.f32 %v2028_v16, %v590_v61  ;;  %vm750_vm9 = vweird.f32 %v2028_v16 }
 0x2b8   : > { %2029 = vrcp.f32 %v593_v50  ;;  %v742_v20 = vsel %vm739_vm7, %v741_v34, %v737_v18  ;;  %vm751_vm11 = vmor %vm749_vm10, %vm750_vm9  ;;  %v768_v62 = vand.u32 2147483647, %v593_v50  ;;  %vm764_vm14 = vweird.f32 %v593_v50  ;;  %v1002_v34 = vld [vmem:[%s2794_s2 + $0xd8] sm:$0xff] }
 0x2b9   : > { %v746_v24 = vsub.f32 1.0, %v745_v21  ;;  %v743_v27 = vmul.f32 %v2378_v26, %v742_v20  ;;  %1064 = vmatpush.msrb.mxu3 %v1002_v34 }
 0x2ba   : > { %vm769_vm1 = vcmp.eq.f32.partialorder %v768_v62, 8.507059e+37 }
 0x2bb   : > { %v747_v32 = vmul.f32 %v2028_v16, %v746_v24  ;;  %v857_v12 = vmul.f32 %v743_v27, %v2224_v55  ;;  %v770_v55 = vand.u32 2147483648, %v593_v50  ;;  %v1000_v27 = vld [vmem:[%s2794_s2 + $0xc8] sm:$0xff] }
 0x2bc   : > { %1888 = vmatmul.msk.f32.gmra.mxu1 %vm1142_vm8, %v1130_v44 }
 0x2bd   : > { %v748_v7 = vadd.f32 %v2028_v16, %v747_v32  ;;  %1851 = vmatmul.msk.f32.gmra.mxu2 %vm351_vm0, %v857_v12  ;;  %v771_v48 = vor.u32 1.1754944e-38, %v770_v55  ;;  %v1272_v32 = vld [vmem:[%s2794_s2 + $0x120] sm:$0xff]  ;;  %v1132_v12 = vld [vmem:[%s2443_s23 + $0x78] sm:$0xff]  ;;  %s246_s23 = scalar_lea.vmem %s2797_s5, %s1826_s20 }
 0x2be   : > { %v2030_v49 = vpop.eup %2029 }
 0x2bf   : > { %v760_v30 = vmul.f32 %v2030_v49, %v593_v50  ;;  %v596_v31 = vpop.xlane.xlu0 %595  ;;  %v752_v33 = vsel %vm751_vm11, %v2028_v16, %v748_v7  ;;  %vm765_vm13 = vweird.f32 %v2030_v49  ;;  %v1001_v50 = vld [vmem:[%s2794_s2 + $0xd0] sm:$0xff] }
 0x2c0   : > { %2031 = vrcp.f32 %v596_v31  ;;  %v757_v35 = vsel %vm754_vm12, %v756_v23, %v752_v33  ;;  %vm766_vm15 = vmor %vm764_vm14, %vm765_vm13  ;;  %v785_v53 = vand.u32 2147483648, %v596_v31  ;;  %vm779_vm3 = vweird.f32 %v596_v31  ;;  %1065 = vmatpush.msrb.mxu3 %v1001_v50 }
 0x2c1   : > { %v761_v26 = vsub.f32 1.0, %v760_v30  ;;  %v758_v45 = vmul.f32 %v2387_v13, %v757_v35 }
 0x2c2   : > { %v786_v2 = vor.u32 1.1754944e-38, %v785_v53  ;;  %1066 = vmatpush.msrb.mxu3 %v1000_v27 }
 0x2c3   : > { %v762_v37 = vmul.f32 %v2030_v49, %v761_v26  ;;  %v858_v36 = vmul.f32 %v758_v45, %v2229_v57  ;;  %v783_v57 = vand.u32 2147483647, %v596_v31 }
 0x2c4   : > { %1889 = vmatmul.msk.f32.gmra.mxu1 %vm1142_vm8, %v1131_v40 }
 0x2c5   : > { %v763_v38 = vadd.f32 %v2030_v49, %v762_v37  ;;  %1852 = vmatmul.msk.f32.gmra.mxu2 %vm351_vm0, %v858_v36  ;;  %vm784_vm5 = vcmp.eq.f32.partialorder %v783_v57, 8.507059e+37 }
 0x2c6   : > { %v2032_v51 = vpop.eup %2031 }
 0x2c7   : > { %v775_v52 = vmul.f32 %v2032_v51, %v596_v31  ;;  %v767_v56 = vsel %vm766_vm15, %v2030_v49, %v763_v38  ;;  %v599_v22 = vpop.xlane.xlu1 %598  ;;  %vm780_vm2 = vweird.f32 %v2032_v51  ;;  %v999_v49 = vld [vmem:[%s2794_s2 + $0xc0] sm:$0xff] }
 0x2c8   : > { %v772_v29 = vsel %vm769_vm1, %v771_v48, %v767_v56  ;;  %2033 = vrcp.f32 %v599_v22  ;;  %vm781_vm4 = vmor %vm779_vm3, %vm780_vm2  ;;  %v800_v11 = vand.u32 2147483648, %v599_v22  ;;  %v798_v16 = vand.u32 2147483647, %v599_v22  ;;  %1067 = vmatpush.msrb.mxu3 %v999_v49 }
 0x2c9   : > { %v776_v58 = vsub.f32 1.0, %v775_v52  ;;  %v773_v13 = vmul.f32 %v2397_v39, %v772_v29  ;;  %v1274_v39 = vld [vmem:[%s2794_s2 + $0x130] sm:$0xff]  ;;  %vm794_vm7 = vweird.f32 %v599_v22 }
 0x2ca   : > { %1338 = vmatpush.msrb.mxu2 %v1274_v39  ;;  %v801_v25 = vor.u32 1.1754944e-38, %v800_v11  ;;  %vm799_vm10 = vcmp.eq.f32.partialorder %v798_v16, 8.507059e+37 }
 0x2cb   : > { %v777_v0 = vmul.f32 %v2032_v51, %v776_v58  ;;  %v859_v17 = vmul.f32 %v773_v13, %v2234_v59  ;;  %v935_v13 = vpop.f32.mrf.mxu2 }
 0x2cc   : > { %1890 = vmatmul.msk.f32.gmra.mxu1 %vm1142_vm8, %v1132_v12 }
 0x2cd   : > { %v778_v1 = vadd.f32 %v2032_v51, %v777_v0  ;;  %1853 = vmatmul.msk.f32.gmra.mxu2 %vm351_vm0, %v859_v17 }
 0x2ce   : > { %v2034_v3 = vpop.eup %2033 }
 0x2cf   : > { %v602_v47 = vpop.xlane.xlu2 %601  ;;  %v782_v61 = vsel %vm781_vm4, %v2032_v51, %v778_v1  ;;  %v790_v5 = vmul.f32 %v2034_v3, %v599_v22  ;;  %vm795_vm6 = vweird.f32 %v2034_v3 }
 0x2d0   : > { %2035 = vrcp.f32 %v602_v47  ;;  %v787_v41 = vsel %vm784_vm5, %v786_v2, %v782_v61  ;;  %vm796_vm9 = vmor %vm794_vm7, %vm795_vm6  ;;  %v815_v31 = vand.u32 2147483648, %v602_v47  ;;  %v813_v26 = vand.u32 2147483647, %v602_v47 }
 0x2d1   : > { %v791_v59 = vsub.f32 1.0, %v790_v5  ;;  %v788_v60 = vmul.f32 %v2411_v10, %v787_v41  ;;  %v2542_v18 = vpop.f32.mrf.mxu1  ;;  %vm809_vm12 = vweird.f32 %v602_v47 }
 0x2d2   : > { %v816_v62 = vor.u32 1.1754944e-38, %v815_v31  ;;  %vm814_vm14 = vcmp.eq.f32.partialorder %v813_v26, 8.507059e+37 }
 0x2d3   : > { %v792_v8 = vmul.f32 %v2034_v3, %v791_v59  ;;  %v860_v15 = vmul.f32 %v788_v60, %v2241_v63  ;;  %v1273_v63 = vld [vmem:[%s2794_s2 + $0x128] sm:$0xff]  ;;  %v938_v40 = vpop.f32.mrf.mxu2 }
 0x2d4   : > { %1339 = vmatpush.msrb.mxu2 %v1273_v63 }
 0x2d5   : > { %v793_v21 = vadd.f32 %v2034_v3, %v792_v8  ;;  %1854 = vmatmul.msk.f32.gmra.mxu2 %vm351_vm0, %v860_v15 }
 0x2d6   : > { %v2036_v10 = vpop.eup %2035  ;;  %1340 = vmatpush.msrb.mxu2 %v1272_v32 }
 0x2d7   : > { %v805_v20 = vmul.f32 %v2036_v10, %v602_v47  ;;  %v605_v24 = vpop.xlane.xlu0 %604  ;;  %v797_v43 = vsel %vm796_vm9, %v2034_v3, %v793_v21  ;;  %vm810_vm11 = vweird.f32 %v2036_v10 }
 0x2d8   : > { %2037 = vrcp.f32 %v605_v24  ;;  %v802_v7 = vsel %vm799_vm10, %v801_v25, %v797_v43  ;;  %vm811_vm13 = vmor %vm809_vm12, %vm810_vm11  ;;  %v830_v51 = vand.u32 2147483648, %v605_v24  ;;  %v828_v56 = vand.u32 2147483647, %v605_v24 }
 0x2d9   : > { %v806_v28 = vsub.f32 1.0, %v805_v20  ;;  %v803_v23 = vmul.f32 %v2449_v42, %v802_v7  ;;  %v1211_v35 = vpop.f32.mrf.mxu1  ;;  %vm824_vm15 = vweird.f32 %v605_v24 }
 0x2da   : > { %v831_v0 = vor.u32 1.1754944e-38, %v830_v51  ;;  %vm829_vm2 = vcmp.eq.f32.partialorder %v828_v56, 8.507059e+37 }
 0x2db   : > { %v807_v30 = vmul.f32 %v2036_v10, %v806_v28  ;;  %v861_v55 = vmul.f32 %v803_v23, %v2248_v4 }
 0x2dd   : > { %v808_v33 = vadd.f32 %v2036_v10, %v807_v30  ;;  %1855 = vmatmul.msk.f32.gmra.mxu2 %vm351_vm0, %v861_v55 }
 0x2de   : > { %v2038_v37 = vpop.eup %2037 }
 0x2df   : > { %v820_v45 = vmul.f32 %v2038_v37, %v605_v24  ;;  %v608_v44 = vpop.xlane.xlu1 %607  ;;  %v812_v38 = vsel %vm811_vm13, %v2036_v10, %v808_v33  ;;  %vm825_vm8 = vweird.f32 %v2038_v37 }
 0x2e0   : > { %2039 = vrcp.f32 %v608_v44  ;;  %v817_v36 = vsel %vm814_vm14, %v816_v62, %v812_v38  ;;  %vm826_vm1 = vmor %vm824_vm15, %vm825_vm8  ;;  %v845_v3 = vand.u32 2147483648, %v608_v44  ;;  %v843_v61 = vand.u32 2147483647, %v608_v44 }
 0x2e1   : > { %v821_v42 = vsub.f32 1.0, %v820_v45  ;;  %v818_v48 = vmul.f32 %v2466_v6, %v817_v36  ;;  %v1214_v29 = vpop.f32.mrf.mxu1  ;;  %vm839_vm4 = vweird.f32 %v608_v44 }
 0x2e2   : > { %v846_v41 = vor.u32 1.1754944e-38, %v845_v3  ;;  %vm844_vm6 = vcmp.eq.f32.partialorder %v843_v61, 8.507059e+37 }
 0x2e3   : > { %v822_v52 = vmul.f32 %v2038_v37, %v821_v42  ;;  %v862_v4 = vmul.f32 %v818_v48, %v2255_v9  ;;  %v2570_v9 = vld [vmem:[%s2795_s3] sm:$0xff] }
 0x2e4   : > { %v2573_v2 = vperm.slane %v2570_v9, 4  ;;  %v2581_v15 = vperm.slane %v2570_v9, 2 }
 0x2e5   : > { %v823_v22 = vadd.f32 %v2038_v37, %v822_v52  ;;  %1856 = vmatmul.msk.f32.gmra.mxu2 %vm351_vm0, %v862_v4 }
 0x2e6   : > { %v2040_v58 = vpop.eup %2039  ;;  %v1209_v60 = vadd.f32 %v2542_v18, %v2573_v2  ;;  %v936_v34 = vadd.f32 %v935_v13, %v2581_v15  ;;  %v1212_v50 = vadd.f32 %v1211_v35, %v2573_v2  ;;  %v941_v18 = vpop.f32.mrf.mxu2  ;;  %v1413_v13 = vld [vmem:[%s2794_s2 + $0x178] sm:$0xff] }
 0x2e7   : > { %v827_v53 = vsel %vm826_vm1, %v2038_v37, %v823_v22  ;;  %v835_v57 = vmul.f32 %v2040_v58, %v608_v44  ;;  %vm840_vm3 = vweird.f32 %v2040_v58  ;;  %v942_v25 = vadd.f32 %v941_v18, %v2581_v15 }
 0x2e8   : > { %v832_v17 = vsel %vm829_vm2, %v831_v0, %v827_v53  ;;  %vm841_vm5 = vmor %vm839_vm4, %vm840_vm3  ;;  %v1256_v16 = vmax.f32 %v1209_v60, 0.0  ;;  %v983_v21 = vmax.f32 %v936_v34, 0.0  ;;  %v1257_v63 = vmax.f32 %v1212_v50, 0.0  ;;  %v1412_v34 = vld [vmem:[%s2794_s2 + $0x170] sm:$0xff] }
 0x2e9   : > { %v836_v1 = vsub.f32 1.0, %v835_v57  ;;  %v833_v6 = vmul.f32 %v2480_v54, %v832_v17  ;;  %v1217_v59 = vpop.f32.mrf.mxu1  ;;  %v985_v28 = vmax.f32 %v942_v25, 0.0 }
 0x2ea   : > { %v1218_v12 = vadd.f32 %v1217_v59, %v2573_v2 }
 0x2eb   : > { %v837_v47 = vmul.f32 %v2040_v58, %v836_v1  ;;  %v863_v39 = vmul.f32 %v833_v6, %v2262_v14 }
 0x2ec   : > { %v1259_v43 = vmax.f32 %v1218_v12, 0.0 }
 0x2ed   : > { %v838_v5 = vadd.f32 %v2040_v58, %v837_v47  ;;  %1857 = vmatmul.msk.f32.gmra.mxu2 %vm351_vm0, %v863_v39 }
 0x2ee   : > { %v944_v32 = vpop.f32.mrf.mxu2 }
 0x2ef   : > { %v842_v54 = vsel %vm841_vm5, %v2040_v58, %v838_v5  ;;  %v945_v30 = vadd.f32 %v944_v32, %v2581_v15 }
 0x2f0   : > { %v847_v8 = vsel %vm844_vm6, %v846_v41, %v842_v54 }
 0x2f1   : > { %v848_v11 = vmul.f32 %v2489_v46, %v847_v8  ;;  %v1220_v10 = vpop.f32.mrf.mxu1  ;;  %v939_v46 = vadd.f32 %v938_v40, %v2581_v15  ;;  %v986_v23 = vmax.f32 %v945_v30, 0.0 }
 0x2f2   : > { %v1221_v31 = vadd.f32 %v1220_v10, %v2573_v2 }
 0x2f3   : > { %v864_v14 = vmul.f32 %v848_v11, %v2269_v19  ;;  %v1215_v19 = vadd.f32 %v1214_v29, %v2573_v2  ;;  %v984_v24 = vmax.f32 %v939_v46, 0.0 }
 0x2f4   : > { %v1260_v26 = vmax.f32 %v1221_v31, 0.0 }
 0x2f5   : > { %1858 = vmatmul.msk.f32.vlgmr.msra.gmra.mxu3 %vm351_vm0, %v864_v14  ;;  %1891 = vmatmul.msk.f32.vlgmr.msrb.gmra.mxu2 %vm351_vm0, %v1256_v16  ;;  %v1258_v27 = vmax.f32 %v1215_v19, 0.0  ;;  %v1409_v16 = vld [vmem:[%s2794_s2 + $0x158] sm:$0xff] }
 0x2f6   : > { %v947_v7 = vpop.f32.mrf.mxu2  ;;  %1474 = vmatpush.msra.mxu3 %v1413_v13  ;;  %1587 = vmatpush.msrb.mxu0 %v1409_v16 }
 0x2f7   : > { %v948_v55 = vadd.f32 %v947_v7, %v2581_v15  ;;  %1962 = vmatpush.msra.mxu2 %v1409_v16  ;;  %v1406_v7 = vld [vmem:[%s2794_s2 + $0x140] sm:$0xff] }
 0x2f8   : > { %1475 = vmatpush.msra.mxu3 %v1412_v34 }
 0x2f9   : > { %v1223_v20 = vpop.f32.mrf.mxu1  ;;  %v987_v62 = vmax.f32 %v948_v55, 0.0 }
 0x2fa   : > { %v1224_v35 = vadd.f32 %v1223_v20, %v2573_v2 }
 0x2fc   : > { %v1261_v45 = vmax.f32 %v1224_v35, 0.0 }
 0x2fd   : > { %1859 = vmatmul.msk.f32.vlgmr.msrb.gmra.mxu3 %vm351_vm0, %v983_v21  ;;  %1892 = vmatmul.msk.f32.gmra.mxu2 %vm351_vm0, %v1257_v63 }
 0x2fe   : > { %v950_v37 = vpop.f32.mrf.mxu2 }
 0x2ff   : > { %v951_v44 = vadd.f32 %v950_v37, %v2581_v15 }
 0x301   : > { %v1226_v49 = vpop.f32.mrf.mxu1  ;;  %v988_v51 = vmax.f32 %v951_v44, 0.0 }
 0x302   : > { %v1227_v38 = vadd.f32 %v1226_v49, %v2573_v2  ;;  %v1411_v49 = vld [vmem:[%s2794_s2 + $0x168] sm:$0xff] }
 0x303   : > { %1476 = vmatpush.msra.mxu3 %v1411_v49 }
 0x304   : > { %v1262_v48 = vmax.f32 %v1227_v38, 0.0 }
 0x305   : > { %1860 = vmatmul.msk.f32.gmra.mxu3 %vm351_vm0, %v984_v24  ;;  %1893 = vmatmul.msk.f32.gmra.mxu2 %vm351_vm0, %v1258_v27 }
 0x306   : > { %v953_v36 = vpop.f32.mrf.mxu2 }
 0x307   : > { %v954_v52 = vadd.f32 %v953_v36, %v2581_v15 }
 0x309   : > { %v1229_v33 = vpop.f32.mrf.mxu1  ;;  %v989_v22 = vmax.f32 %v954_v52, 0.0 }
 0x30a   : > { %v1230_v56 = vadd.f32 %v1229_v33, %v2573_v2 }
 0x30c   : > { %v1263_v29 = vmax.f32 %v1230_v56, 0.0  ;;  %v2672_v56 = vperm.slane %v2570_v9, 5 }
 0x30d   : > { %1861 = vmatmul.msk.f32.gmra.mxu3 %vm351_vm0, %v985_v28  ;;  %1894 = vmatmul.msk.f32.gmra.mxu2 %vm351_vm0, %v1259_v43  ;;  %v1408_v28 = vld [vmem:[%s2794_s2 + $0x150] sm:$0xff]  ;;  %v1407_v43 = vld [vmem:[%s2794_s2 + $0x148] sm:$0xff] }
 0x30e   : > { %v956_v58 = vpop.f32.mrf.mxu2  ;;  %1588 = vmatpush.msrb.mxu0 %v1408_v28  ;;  %1963 = vmatpush.msra.mxu2 %v1408_v28 }
 0x30f   : > { %v957_v0 = vadd.f32 %v956_v58, %v2581_v15 }
 0x310   : > { %1589 = vmatpush.msrb.mxu0 %v1407_v43  ;;  %1964 = vmatpush.msra.mxu2 %v1407_v43 }
 0x311   : > { %v1232_v42 = vpop.f32.mrf.mxu1  ;;  %v990_v57 = vmax.f32 %v957_v0, 0.0 }
 0x312   : > { %v1233_v53 = vadd.f32 %v1232_v42, %v2573_v2  ;;  %1590 = vmatpush.msrb.mxu0 %v1406_v7  ;;  %1965 = vmatpush.msra.mxu2 %v1406_v7 }
 0x314   : > { %v1264_v17 = vmax.f32 %v1233_v53, 0.0 }
 0x315   : > { %1862 = vmatmul.msk.f32.gmra.mxu3 %vm351_vm0, %v986_v23  ;;  %1895 = vmatmul.msk.f32.gmra.mxu2 %vm351_vm0, %v1260_v26  ;;  %v1410_v26 = vld [vmem:[%s2794_s2 + $0x160] sm:$0xff] }
 0x316   : > { %1477 = vmatpush.msra.mxu3 %v1410_v26 }
 0x319   : > { %v1235_v4 = vpop.f32.mrf.mxu1 }
 0x31a   : > { %v1236_v6 = vadd.f32 %v1235_v4, %v2573_v2  ;;  %v2675_v4 = vperm.slane %v2570_v9, 3 }
 0x31c   : > { %v1265_v3 = vmax.f32 %v1236_v6, 0.0 }
 0x31d   : > { %1863 = vmatmul.msk.f32.gmra.mxu3 %vm351_vm0, %v987_v62  ;;  %1896 = vmatmul.msk.f32.gmra.mxu2 %vm351_vm0, %v1261_v45 }
 0x321   : > { %v1238_v1 = vpop.f32.mrf.mxu1 }
 0x322   : > { %v1239_v61 = vadd.f32 %v1238_v1, %v2573_v2 }
 0x324   : > { %v1266_v41 = vmax.f32 %v1239_v61, 0.0 }
 0x325   : > { %1864 = vmatmul.msk.f32.gmra.mxu3 %vm351_vm0, %v988_v51  ;;  %1897 = vmatmul.msk.f32.gmra.mxu2 %vm351_vm0, %v1262_v48 }
 0x329   : > { %v1241_v47 = vpop.f32.mrf.mxu1 }
 0x32a   : > { %v1242_v54 = vadd.f32 %v1241_v47, %v2573_v2 }
 0x32c   : > { %v1267_v11 = vmax.f32 %v1242_v54, 0.0 }
 0x32d   : > { %1865 = vmatmul.msk.f32.gmra.mxu3 %vm351_vm0, %v989_v22  ;;  %1898 = vmatmul.msk.f32.gmra.mxu2 %vm351_vm0, %v1263_v29 }
 0x331   : > { %v1244_v60 = vpop.f32.mrf.mxu1 }
 0x332   : > { %v1245_v50 = vadd.f32 %v1244_v60, %v2573_v2 }
 0x334   : > { %v1268_v63 = vmax.f32 %v1245_v50, 0.0 }
 0x335   : > { %1866 = vmatmul.msk.f32.gmra.mxu3 %vm351_vm0, %v990_v57  ;;  %1899 = vmatmul.msk.f32.gmra.mxu2 %vm351_vm0, %v1264_v17 }
 0x339   : > { %v1247_v18 = vpop.f32.mrf.mxu1 }
 0x33a   : > { %v1248_v19 = vadd.f32 %v1247_v18, %v2573_v2 }
 0x33c   : > { %v1269_v32 = vmax.f32 %v1248_v19, 0.0 }
 0x33d   : > { %1900 = vmatmul.msk.f32.gmra.mxu2 %vm351_vm0, %v1265_v3 }
 0x340   : > { %v959_v39 = vpop.f32.mrf.mxu2 }
 0x341   : > { %v960_v5 = vadd.f32 %v959_v39, %v2581_v15  ;;  %v1250_v24 = vpop.f32.mrf.mxu1 }
 0x342   : > { %v1251_v12 = vadd.f32 %v1250_v24, %v2573_v2 }
 0x343   : > { %v991_v59 = vmax.f32 %v960_v5, 0.0 }
 0x344   : > { %v1270_v23 = vmax.f32 %v1251_v12, 0.0 }
 0x345   : > { %1867 = vmatmul.msk.f32.gmra.mxu3 %vm351_vm0, %v991_v59  ;;  %1901 = vmatmul.msk.f32.gmra.mxu2 %vm351_vm0, %v1266_v41 }
 0x348   : > { %v962_v40 = vpop.f32.mrf.mxu2 }
 0x349   : > { %v963_v8 = vadd.f32 %v962_v40, %v2581_v15  ;;  %v1253_v33 = vpop.f32.mrf.mxu1 }
 0x34a   : > { %v1254_v35 = vadd.f32 %v1253_v33, %v2573_v2 }
 0x34b   : > { %v992_v14 = vmax.f32 %v963_v8, 0.0 }
 0x34c   : > { %v1271_v45 = vmax.f32 %v1254_v35, 0.0 }
 0x34d   : > { %1868 = vmatmul.msk.f32.gmra.mxu3 %vm351_vm0, %v992_v14  ;;  %1902 = vmatmul.msk.f32.gmra.mxu2 %vm351_vm0, %v1267_v11 }
 0x350   : > { %v965_v10 = vpop.f32.mrf.mxu2 }
 0x351   : > { %v966_v21 = vadd.f32 %v965_v10, %v2581_v15 }
 0x353   : > { %v993_v46 = vmax.f32 %v966_v21, 0.0 }
 0x355   : > { %1869 = vmatmul.msk.f32.gmra.mxu3 %vm351_vm0, %v993_v46  ;;  %1903 = vmatmul.msk.f32.gmra.mxu2 %vm351_vm0, %v1268_v63 }
 0x358   : > { %v968_v20 = vpop.f32.mrf.mxu2 }
 0x359   : > { %v969_v27 = vadd.f32 %v968_v20, %v2581_v15 }
 0x35b   : > { %v994_v25 = vmax.f32 %v969_v27, 0.0 }
 0x35d   : > { %1870 = vmatmul.msk.f32.gmra.mxu3 %vm351_vm0, %v994_v25  ;;  %1904 = vmatmul.msk.f32.gmra.mxu2 %vm351_vm0, %v1269_v32 }
 0x360   : > { %v971_v30 = vpop.f32.mrf.mxu2 }
 0x361   : > { %v972_v31 = vadd.f32 %v971_v30, %v2581_v15 }
 0x363   : > { %v995_v55 = vmax.f32 %v972_v31, 0.0 }
 0x365   : > { %1871 = vmatmul.msk.f32.gmra.mxu3 %vm351_vm0, %v995_v55  ;;  %1905 = vmatmul.msk.f32.gmra.mxu2 %vm351_vm0, %v1270_v23 }
 0x368   : > { %v974_v37 = vpop.f32.mrf.mxu2 }
 0x369   : > { %v975_v62 = vadd.f32 %v974_v37, %v2581_v15 }
 0x36b   : > { %v996_v44 = vmax.f32 %v975_v62, 0.0 }
 0x36d   : > { %1872 = vmatmul.msk.f32.gmra.mxu3 %vm351_vm0, %v996_v44  ;;  %1906 = vmatmul.msk.f32.gmra.mxu2 %vm351_vm0, %v1271_v45 }
 0x370   : > { %v977_v38 = vpop.f32.mrf.mxu2 }
 0x371   : > { %v978_v42 = vadd.f32 %v977_v38, %v2581_v15 }
 0x373   : > { %v997_v36 = vmax.f32 %v978_v42, 0.0 }
 0x375   : > { %1873 = vmatmul.msk.f32.gmra.mxu3 %vm351_vm0, %v997_v36 }
 0x378   : > { %v980_v51 = vpop.f32.mrf.mxu3  ;;  %v1342_v52 = vpop.f32.mrf.mxu2 }
 0x379   : > { %v981_v48 = vadd.f32 %v980_v51, %v2581_v15  ;;  %v1343_v22 = vadd.f32 %v1342_v52, %v2672_v56 }
 0x37b   : > { %v998_v2 = vmax.f32 %v981_v48, 0.0  ;;  %v1390_v0 = vmax.f32 %v1343_v22, 0.0 }
 0x37d   : > { %1874 = vmatmul.msk.f32.gmra.mxu3 %vm351_vm0, %v998_v2 }
 0x380   : > { %v1069_v29 = vpop.f32.mrf.mxu3  ;;  %v1345_v13 = vpop.f32.mrf.mxu2 }
 0x381   : > { %v1070_v58 = vadd.f32 %v1069_v29, %v2675_v4  ;;  %v1346_v15 = vadd.f32 %v1345_v13, %v2672_v56 }
 0x383   : > { %1923 = vmatmul.msk.f32.vlgmr.msrb.gmra.mxu0 %vm351_vm0, %v1070_v58  ;;  %v1391_v1 = vmax.f32 %v1346_v15, 0.0 }
 0x385   : > { %1907 = vmatmul.msk.f32.vlgmr.msra.gmra.mxu3 %vm351_vm0, %v1390_v0 }
 0x388   : > { %v1072_v53 = vpop.f32.mrf.mxu3  ;;  %v1348_v17 = vpop.f32.mrf.mxu2 }
 0x389   : > { %v1073_v57 = vadd.f32 %v1072_v53, %v2675_v4  ;;  %v1349_v6 = vadd.f32 %v1348_v17, %v2672_v56 }
 0x38b   : > { %1924 = vmatmul.msk.f32.gmra.mxu0 %vm351_vm0, %v1073_v57  ;;  %v1392_v39 = vmax.f32 %v1349_v6, 0.0 }
 0x38d   : > { %1908 = vmatmul.msk.f32.gmra.mxu3 %vm351_vm0, %v1391_v1 }
 0x390   : > { %v1075_v3 = vpop.f32.mrf.mxu3  ;;  %v1351_v61 = vpop.f32.mrf.mxu2 }
 0x391   : > { %v1076_v47 = vadd.f32 %v1075_v3, %v2675_v4  ;;  %v1352_v5 = vadd.f32 %v1351_v61, %v2672_v56 }
 0x393   : > { %1925 = vmatmul.msk.f32.gmra.mxu0 %vm351_vm0, %v1076_v47  ;;  %v1393_v60 = vmax.f32 %v1352_v5, 0.0 }
 0x395   : > { %1909 = vmatmul.msk.f32.gmra.mxu3 %vm351_vm0, %v1392_v39 }
 0x398   : > { %v1078_v41 = vpop.f32.mrf.mxu3  ;;  %v1354_v54 = vpop.f32.mrf.mxu2 }
 0x399   : > { %v1079_v59 = vadd.f32 %v1078_v41, %v2675_v4  ;;  %v1355_v40 = vadd.f32 %v1354_v54, %v2672_v56 }
 0x39b   : > { %1926 = vmatmul.msk.f32.gmra.mxu0 %vm351_vm0, %v1079_v59  ;;  %v1394_v16 = vmax.f32 %v1355_v40, 0.0 }
 0x39d   : > { %1910 = vmatmul.msk.f32.gmra.mxu3 %vm351_vm0, %v1393_v60 }
 0x3a0   : > { %v1081_v8 = vpop.f32.mrf.mxu3  ;;  %v1357_v14 = vpop.f32.mrf.mxu2 }
 0x3a1   : > { %v1082_v11 = vadd.f32 %v1081_v8, %v2675_v4  ;;  %v1358_v34 = vadd.f32 %v1357_v14, %v2672_v56 }
 0x3a3   : > { %1927 = vmatmul.msk.f32.gmra.mxu0 %vm351_vm0, %v1082_v11  ;;  %v1395_v21 = vmax.f32 %v1358_v34, 0.0 }
 0x3a5   : > { %1911 = vmatmul.msk.f32.gmra.mxu3 %vm351_vm0, %v1394_v16 }
 0x3a8   : > { %v1084_v50 = vpop.f32.mrf.mxu3  ;;  %v1360_v18 = vpop.f32.mrf.mxu2 }
 0x3a9   : > { %v1085_v10 = vadd.f32 %v1084_v50, %v2675_v4  ;;  %v1361_v63 = vadd.f32 %v1360_v18, %v2672_v56 }
 0x3ab   : > { %1928 = vmatmul.msk.f32.gmra.mxu0 %vm351_vm0, %v1085_v10  ;;  %v1396_v24 = vmax.f32 %v1361_v63, 0.0 }
 0x3ad   : > { %1912 = vmatmul.msk.f32.gmra.mxu3 %vm351_vm0, %v1395_v21 }
 0x3b0   : > { %v1087_v46 = vpop.f32.mrf.mxu3  ;;  %v1363_v20 = vpop.f32.mrf.mxu2 }
 0x3b1   : > { %v1088_v19 = vadd.f32 %v1087_v46, %v2675_v4  ;;  %v1364_v27 = vadd.f32 %v1363_v20, %v2672_v56 }
 0x3b3   : > { %1929 = vmatmul.msk.f32.gmra.mxu0 %vm351_vm0, %v1088_v19  ;;  %v1397_v28 = vmax.f32 %v1364_v27, 0.0 }
 0x3b5   : > { %1913 = vmatmul.msk.f32.gmra.mxu3 %vm351_vm0, %v1396_v24 }
 0x3b8   : > { %v1090_v32 = vpop.f32.mrf.mxu3  ;;  %v1366_v12 = vpop.f32.mrf.mxu2 }
 0x3b9   : > { %v1091_v25 = vadd.f32 %v1090_v32, %v2675_v4  ;;  %v1367_v43 = vadd.f32 %v1366_v12, %v2672_v56 }
 0x3bb   : > { %1930 = vmatmul.msk.f32.gmra.mxu0 %vm351_vm0, %v1091_v25  ;;  %v1398_v7 = vmax.f32 %v1367_v43, 0.0 }
 0x3bd   : > { %1914 = vmatmul.msk.f32.gmra.mxu3 %vm351_vm0, %v1397_v28 }
 0x3c0   : > { %v1369_v49 = vpop.f32.mrf.mxu2 }
 0x3c1   : > { %v1370_v30 = vadd.f32 %v1369_v49, %v2672_v56 }
 0x3c3   : > { %v1399_v33 = vmax.f32 %v1370_v30, 0.0 }
 0x3c5   : > { %1915 = vmatmul.msk.f32.gmra.mxu3 %vm351_vm0, %v1398_v7 }
 0x3c8   : > { %v1093_v31 = vpop.f32.mrf.mxu3  ;;  %v1372_v26 = vpop.f32.mrf.mxu2 }
 0x3c9   : > { %v1094_v23 = vadd.f32 %v1093_v31, %v2675_v4  ;;  %v1373_v55 = vadd.f32 %v1372_v26, %v2672_v56 }
 0x3cb   : > { %1931 = vmatmul.msk.f32.gmra.mxu0 %vm351_vm0, %v1094_v23  ;;  %v1400_v45 = vmax.f32 %v1373_v55, 0.0 }
 0x3cd   : > { %1916 = vmatmul.msk.f32.gmra.mxu3 %vm351_vm0, %v1399_v33 }
 0x3d0   : > { %v1096_v35 = vpop.f32.mrf.mxu3  ;;  %v1375_v37 = vpop.f32.mrf.mxu2 }
 0x3d1   : > { %v1097_v62 = vadd.f32 %v1096_v35, %v2675_v4  ;;  %v1376_v44 = vadd.f32 %v1375_v37, %v2672_v56 }
 0x3d3   : > { %1932 = vmatmul.msk.f32.gmra.mxu0 %vm351_vm0, %v1097_v62  ;;  %v1401_v51 = vmax.f32 %v1376_v44, 0.0 }
 0x3d5   : > { %1917 = vmatmul.msk.f32.gmra.mxu3 %vm351_vm0, %v1400_v45 }
 0x3d8   : > { %v1099_v38 = vpop.f32.mrf.mxu3  ;;  %v1378_v42 = vpop.f32.mrf.mxu2 }
 0x3d9   : > { %v1100_v36 = vadd.f32 %v1099_v38, %v2675_v4  ;;  %v1379_v48 = vadd.f32 %v1378_v42, %v2672_v56  ;;  %v1640_v42 = vperm.slane %v2570_v9, 6 }
 0x3db   : > { %1933 = vmatmul.msk.f32.gmra.mxu0 %vm351_vm0, %v1100_v36  ;;  %v1402_v29 = vmax.f32 %v1379_v48, 0.0 }
 0x3dd   : > { %1918 = vmatmul.msk.f32.gmra.mxu3 %vm351_vm0, %v1401_v51 }
 0x3e0   : > { %v1102_v52 = vpop.f32.mrf.mxu3  ;;  %v1381_v2 = vpop.f32.mrf.mxu2 }
 0x3e1   : > { %v1103_v22 = vadd.f32 %v1102_v52, %v2675_v4  ;;  %v1382_v58 = vadd.f32 %v1381_v2, %v2672_v56 }
 0x3e3   : > { %1934 = vmatmul.msk.f32.gmra.mxu0 %vm351_vm0, %v1103_v22  ;;  %v1403_v53 = vmax.f32 %v1382_v58, 0.0 }
 0x3e5   : > { %1919 = vmatmul.msk.f32.gmra.mxu3 %vm351_vm0, %v1402_v29 }
 0x3e8   : > { %v1105_v13 = vpop.f32.mrf.mxu3  ;;  %v1384_v0 = vpop.f32.mrf.mxu2 }
 0x3e9   : > { %v1106_v15 = vadd.f32 %v1105_v13, %v2675_v4  ;;  %v1385_v57 = vadd.f32 %v1384_v0, %v2672_v56 }
 0x3eb   : > { %1935 = vmatmul.msk.f32.gmra.mxu0 %vm351_vm0, %v1106_v15  ;;  %v1404_v6 = vmax.f32 %v1385_v57, 0.0 }
 0x3ed   : > { %1920 = vmatmul.msk.f32.gmra.mxu3 %vm351_vm0, %v1403_v53 }
 0x3f0   : > { %v1108_v17 = vpop.f32.mrf.mxu3  ;;  %v1387_v3 = vpop.f32.mrf.mxu2 }
 0x3f1   : > { %v1109_v1 = vadd.f32 %v1108_v17, %v2675_v4  ;;  %v1388_v47 = vadd.f32 %v1387_v3, %v2672_v56 }
 0x3f3   : > { %1936 = vmatmul.msk.f32.gmra.mxu0 %vm351_vm0, %v1109_v1  ;;  %v1405_v5 = vmax.f32 %v1388_v47, 0.0 }
 0x3f5   : > { %1921 = vmatmul.msk.f32.gmra.mxu3 %vm351_vm0, %v1404_v6 }
 0x3f8   : > { %v1111_v61 = vpop.f32.mrf.mxu3 }
 0x3f9   : > { %v1112_v39 = vadd.f32 %v1111_v61, %v2675_v4 }
 0x3fb   : > { %1937 = vmatmul.msk.f32.vlgmr.msra.gmra.mxu2 %vm351_vm0, %v1112_v39 }
 0x3fd   : > { %1922 = vmatmul.msk.f32.gmra.mxu3 %vm351_vm0, %v1405_v5 }
 0x400   : > { %v1592_v41 = vpop.f32.mrf.mxu0  ;;  %v1114_v59 = vpop.f32.mrf.mxu3 }
 0x401   : > { %v1115_v54 = vadd.f32 %v1114_v59, %v2675_v4 }
 0x403   : > { %1938 = vmatmul.msk.f32.gmra.mxu2 %vm351_vm0, %v1115_v54 }
 0x408   : > { %v1595_v60 = vpop.f32.mrf.mxu0  ;;  %v1479_v40 = vpop.f32.mrf.mxu3 }
 0x409   : > { %v2742_v8 = vadd.f32 %v1592_v41, %v1479_v40 }
 0x410   : > { %v1598_v11 = vpop.f32.mrf.mxu0  ;;  %v1482_v56 = vpop.f32.mrf.mxu3 }
 0x411   : > { %v2744_v14 = vadd.f32 %v1595_v60, %v1482_v56  ;;  %v1674_v56 = vld [vmem:[%s2796_s4] sm:$0xff] }
 0x418   : > { %v1485_v16 = vpop.f32.mrf.mxu3  ;;  %v1601_v34 = vpop.f32.mrf.mxu0 }
 0x419   : > { %v2746_v50 = vadd.f32 %v1598_v11, %v1485_v16  ;;  %v2050_v16 = vmov 0  }
 0x41a   : > { %1975 = vset.pattern.permute.xlu2 %v2050_v16  ;;  %1976 = vset.pattern.permute.xlu0 %v2050_v16 }
 0x41b   : > { %1677 = vperm.xlu2 %1975, %v1674_v56  }
 0x420   : > { %v1488_v10 = vpop.f32.mrf.mxu3  ;;  %v1604_v21 = vpop.f32.mrf.mxu0 }
 0x421   : > { %v2748_v18 = vadd.f32 %v1601_v34, %v1488_v10 }
 0x428   : > { %v1491_v63 = vpop.f32.mrf.mxu3  ;;  %v1607_v46 = vpop.f32.mrf.mxu0 }
 0x429   : > { %v2750_v4 = vadd.f32 %v1604_v21, %v1491_v63 }
 0x42b   : > { %v1645_v21 = vadd.f32 %v1640_v42, %v2750_v4  ;;  %v1641_v4 = vadd.f32 %v1640_v42, %v2742_v8 }
 0x430   : > { %v1494_v19 = vpop.f32.mrf.mxu3  ;;  %v1610_v24 = vpop.f32.mrf.mxu0 }
 0x431   : > { %v2752_v20 = vadd.f32 %v1607_v46, %v1494_v19  ;;  %v1644_v46 = vadd.f32 %v1640_v42, %v2748_v18  ;;  %v1661_v19 = vmax.f32 %v1645_v21, 0.0  ;;  %v1657_v18 = vmax.f32 %v1641_v4, 0.0 }
 0x433   : > { %v1646_v34 = vadd.f32 %v1640_v42, %v2752_v20  ;;  %v1642_v20 = vadd.f32 %v1640_v42, %v2744_v14 }
 0x435   : > { %v1662_v63 = vmax.f32 %v1646_v34, 0.0 }
 0x438   : > { %v1497_v27 = vpop.f32.mrf.mxu3  ;;  %v1613_v25 = vpop.f32.mrf.mxu0 }
 0x439   : > { %v1611_v32 = vadd.f32 %v1610_v24, %v1497_v27  ;;  %v1643_v24 = vadd.f32 %v1640_v42, %v2746_v50  ;;  %v1660_v27 = vmax.f32 %v1644_v46, 0.0  ;;  %v1673_v50 = vld [vmem:[%s2794_s2 + $0x180] sm:$0xff] }
 0x43b   : > { %v1647_v40 = vadd.f32 %v1640_v42, %v1611_v32  ;;  %v1659_v32 = vmax.f32 %v1643_v24, 0.0 }
 0x43d   : > { %v1663_v10 = vmax.f32 %v1647_v40, 0.0 }
 0x440   : > { %v1500_v12 = vpop.f32.mrf.mxu3 }
 0x441   : > { %v1614_v28 = vadd.f32 %v1613_v25, %v1500_v12  ;;  %v1658_v25 = vmax.f32 %v1642_v20, 0.0 }
 0x443   : > { %v1648_v54 = vadd.f32 %v1640_v42, %v1614_v28 }
 0x445   : > { %v1664_v11 = vmax.f32 %v1648_v54, 0.0 }
 0x448   : > { %v1503_v43 = vpop.f32.mrf.mxu3  ;;  %v1616_v7 = vpop.f32.mrf.mxu0 }
 0x449   : > { %v1617_v61 = vadd.f32 %v1616_v7, %v1503_v43 }
 0x44b   : > { %v1649_v41 = vadd.f32 %v1640_v42, %v1617_v61 }
 0x44d   : > { %v1665_v60 = vmax.f32 %v1649_v41, 0.0 }
 0x450   : > { %v1506_v49 = vpop.f32.mrf.mxu3  ;;  %v1619_v31 = vpop.f32.mrf.mxu0 }
 0x451   : > { %v1620_v6 = vadd.f32 %v1619_v31, %v1506_v49 }
 0x453   : > { %v1650_v39 = vadd.f32 %v1640_v42, %v1620_v6 }
 0x455   : > { %v1666_v59 = vmax.f32 %v1650_v39, 0.0 }
 0x458   : > { %v1509_v30 = vpop.f32.mrf.mxu3  ;;  %v1622_v33 = vpop.f32.mrf.mxu0 }
 0x459   : > { %v1623_v9 = vadd.f32 %v1622_v33, %v1509_v30 }
 0x45b   : > { %v1651_v3 = vadd.f32 %v1640_v42, %v1623_v9 }
 0x45d   : > { %v1667_v5 = vmax.f32 %v1651_v3, 0.0 }
 0x460   : > { %v1512_v23 = vpop.f32.mrf.mxu3  ;;  %v1625_v35 = vpop.f32.mrf.mxu0 }
 0x461   : > { %v1626_v15 = vadd.f32 %v1625_v35, %v1512_v23 }
 0x463   : > { %v1652_v17 = vadd.f32 %v1640_v42, %v1626_v15 }
 0x465   : > { %v1668_v47 = vmax.f32 %v1652_v17, 0.0 }
 0x468   : > { %v1515_v26 = vpop.f32.mrf.mxu3  ;;  %v1628_v62 = vpop.f32.mrf.mxu0 }
 0x469   : > { %v1629_v58 = vadd.f32 %v1628_v62, %v1515_v26 }
 0x46b   : > { %v1653_v53 = vadd.f32 %v1640_v42, %v1629_v58 }
 0x46d   : > { %v1669_v1 = vmax.f32 %v1653_v53, 0.0 }
 0x470   : > { %v1518_v55 = vpop.f32.mrf.mxu3  ;;  %v1631_v48 = vpop.f32.mrf.mxu0 }
 0x471   : > { %v1632_v2 = vadd.f32 %v1631_v48, %v1518_v55 }
 0x473   : > { %v1654_v13 = vadd.f32 %v1640_v42, %v1632_v2 }
 0x475   : > { %v1670_v57 = vmax.f32 %v1654_v13, 0.0  ;;  %v1678_v14 = vpop.permute.xlu2 %1677 }
 0x478   : > { %v1521_v37 = vpop.f32.mrf.mxu3 }
 0x47e   : > { %v1634_v45 = vpop.f32.mrf.mxu2 }
 0x47f   : > { %v1635_v36 = vadd.f32 %v1634_v45, %v1521_v37 }
 0x480   : > { %v1524_v44 = vpop.f32.mrf.mxu3 }
 0x481   : > { %v1655_v22 = vadd.f32 %v1640_v42, %v1635_v36 }
 0x483   : > { %v1671_v0 = vmax.f32 %v1655_v22, 0.0 }
 0x486   : > { %v1637_v38 = vpop.f32.mrf.mxu2 }
 0x487   : > { %v1638_v51 = vadd.f32 %v1637_v38, %v1524_v44 }
 0x489   : > { %v1656_v52 = vadd.f32 %v1640_v42, %v1638_v51 }
 0x48b   : > { %v1672_v29 = vmax.f32 %v1656_v52, 0.0 }
 0x48d   : > { %1939 = vmatpush.xpose.msk.msra.mxu1 %vm351_vm0, %v1672_v29 }
 0x491   : > { %1940 = vmatpush.xpose.msk.msra.mxu1 %vm351_vm0, %v1671_v0 }
 0x495   : > { %1941 = vmatpush.xpose.msk.msra.mxu1 %vm351_vm0, %v1670_v57 }
 0x499   : > { %1942 = vmatpush.xpose.msk.msra.mxu1 %vm351_vm0, %v1669_v1 }
 0x49d   : > { %1943 = vmatpush.xpose.msk.msra.mxu1 %vm351_vm0, %v1668_v47 }
 0x4a1   : > { %1944 = vmatpush.xpose.msk.msra.mxu1 %vm351_vm0, %v1667_v5 }
 0x4a5   : > { %1945 = vmatpush.xpose.msk.msra.mxu1 %vm351_vm0, %v1666_v59 }
 0x4a9   : > { %1946 = vmatpush.xpose.msk.msra.mxu1 %vm351_vm0, %v1665_v60 }
 0x4ad   : > { %1947 = vmatpush.xpose.msk.msra.mxu1 %vm351_vm0, %v1664_v11 }
 0x4b1   : > { %1948 = vmatpush.xpose.msk.msra.mxu1 %vm351_vm0, %v1663_v10 }
 0x4b5   : > { %1949 = vmatpush.xpose.msk.msra.mxu1 %vm351_vm0, %v1662_v63 }
 0x4b9   : > { %1950 = vmatpush.xpose.msk.msra.mxu1 %vm351_vm0, %v1661_v19 }
 0x4bd   : > { %1951 = vmatpush.xpose.msk.msra.mxu1 %vm351_vm0, %v1660_v27 }
 0x4c1   : > { %1952 = vmatpush.xpose.msk.msra.mxu1 %vm351_vm0, %v1659_v32 }
 0x4c5   : > { %1953 = vmatpush.xpose.msk.msra.mxu1 %vm351_vm0, %v1658_v25 }
 0x4c9   : > { %1954 = vmatpush.xpose.msk.msra.mxu1 %vm351_vm0, %v1657_v18 }
 0x4cc   : > { %1955 = vmatmul.msk.f32.vlgmr.msra.gmra.mxu1 %vm351_vm0, %v1673_v50 }
 0x549   : > { %v1748_v8 = vpop.f32.mrf.mxu1 }
 0x54a   : > { %v1749_v12 = vadd.f32 %v1748_v8, %v1678_v14 }
 0x54c   : > { %1751 = vst [vmem:[%s246_s23] sm:$0xff] %v1749_v12 }
 0x54d PF: > { %s15_s18 = sadd.s32 1, %s2048_s18  }
 0x54e   : > { %p12_p5 = scmp.ge.s32.totalorder %s15_s18, 4  }
 0x550   :  { %14 = sbr.rel (!%p12_p5) target bundleno = 1 (0x1), region = 73 }

</bundles_post_ra>
